<compile_context>
chip_gen: v5e
topology: v5e:2x2
jax: 0.10.0
libtpu: 0.0.40
codegen_flags: <defaults>
</compile_context>

<pallas_src>
import functools
import math

import jax
import jax.numpy as jnp
from jax import lax
from jax.experimental import pallas as pl
from jax.experimental.pallas import tpu as pltpu


def _round_up(x, m):
    return (x + m - 1) // m * m


_VMEM_BUDGET = 30 << 20          # working-set target (fits every generation)


# ----------------------------------------------------------------------------
# Pallas kernels
# ----------------------------------------------------------------------------
def _mm_bias_relu_kernel(x_ref, w_ref, b_ref, o_ref):
    acc = jnp.dot(x_ref[...], w_ref[...], preferred_element_type=jnp.float32)
    acc = jnp.maximum(acc + b_ref[...], 0.0)
    o_ref[...] = acc.astype(o_ref.dtype)


def _linear_pe_kernel(x_ref, w_ref, pe_ref, o_ref):
    acc = jnp.dot(x_ref[...], w_ref[...], preferred_element_type=jnp.float32)
    o_ref[...] = (acc + pe_ref[...]).astype(o_ref.dtype)


# ----------------------------------------------------------------------------
# Conv-as-matmul call (stages 1 and 2): relu(x @ w + b)
# ----------------------------------------------------------------------------
def _conv_vmem_bytes(bm, K, N, in_b, out_b):
    return (2 * bm * K * in_b        # x tile, double-buffered
            + 2 * K * N * in_b       # weight (counted double, conservative)
            + 2 * N * 4              # bias
            + 2 * bm * N * out_b)    # output tile, double-buffered


def _pick_bm(M, K, N, tm, in_b, out_b):
    # >= 2 grid steps whenever M > 256 (uses both v7x TensorCores and keeps
    # BlockSpec double-buffering alive); floor ~256 rows amortizes the
    # ~0.35us per-step overhead.
    bm = max(256, _round_up(-(-M // 2), 16))
    bm = min(bm, tm, _round_up(M, 16))
    while bm > 64 and _conv_vmem_bytes(bm, K, N, in_b, out_b) > _VMEM_BUDGET:
        bm = max(64, _round_up(bm // 2, 16))
    return bm


def fused_conv_matmul(x, w, b, *, tm=512, compute_dtype=jnp.bfloat16,
                      out_dtype=jnp.bfloat16):
    """relu(x @ w + b).  K and N are single full blocks; only M is tiled and
    marked "parallel"."""
    M, K = x.shape
    K2, N = w.shape
    assert K == K2 and b.shape[-1] == N

    in_b = jnp.dtype(compute_dtype).itemsize
    out_b = jnp.dtype(out_dtype).itemsize
    bm = _pick_bm(M, K, N, tm, in_b, out_b)
    Mp = _round_up(M, bm)

    x_p = x if Mp == M else jnp.pad(x, ((0, Mp - M), (0, 0)))
    x_p = x_p.astype(compute_dtype)
    w_c = w.astype(compute_dtype)
    b_c = b.reshape(1, N).astype(jnp.float32)

    vmem_limit = int(min(max(_conv_vmem_bytes(bm, K, N, in_b, out_b) + (4 << 20),
                             16 << 20), 48 << 20))

    out = pl.pallas_call(
        _mm_bias_relu_kernel,
        out_shape=jax.ShapeDtypeStruct((Mp, N), out_dtype),
        grid=(Mp // bm,),
        in_specs=[
            pl.BlockSpec((bm, K), lambda i: (i, 0)),
            pl.BlockSpec((K, N), lambda i: (0, 0)),
            pl.BlockSpec((1, N), lambda i: (0, 0)),
        ],
        out_specs=pl.BlockSpec((bm, N), lambda i: (i, 0)),
        compiler_params=pltpu.CompilerParams(
            dimension_semantics=("parallel",),
            vmem_limit_bytes=vmem_limit),
    )(x_p, w_c, b_c)
    return out if Mp == M else out[:M]


# ----------------------------------------------------------------------------
# Stage 3: y[b, t] = feat[b, t] @ w + pe_pb[t]   (bias + PE folded into pe_pb)
# ----------------------------------------------------------------------------
def linear_pe(feat, w, pe_pb, odim, *, compute_dtype=jnp.bfloat16,
              out_dtype=jnp.float32):
    B, T2, K = feat.shape
    K2, Np = w.shape
    assert K == K2 and pe_pb.shape == (T2, Np)

    in_b = jnp.dtype(compute_dtype).itemsize
    bt = min(256, _round_up(T2, 8))
    while bt > 8 and (2 * bt * K * in_b + 2 * K * Np * in_b
                      + 4 * bt * Np * 4) > _VMEM_BUDGET:
        bt = max(8, _round_up(bt // 2, 8))
    T2p = _round_up(T2, bt)

    if T2p != T2:
        feat = jnp.pad(feat, ((0, 0), (0, T2p - T2), (0, 0)))
        pe_pb = jnp.pad(pe_pb, ((0, T2p - T2), (0, 0)))
    feat = feat.astype(compute_dtype)
    pe_pb = pe_pb.astype(jnp.float32)

    vmem_limit = int(min(max(2 * bt * K * in_b + 2 * K * Np * in_b
                             + 4 * bt * Np * 4 + (4 << 20), 16 << 20), 48 << 20))

    out = pl.pallas_call(
        _linear_pe_kernel,
        out_shape=jax.ShapeDtypeStruct((B, T2p, Np), out_dtype),
        grid=(B, T2p // bt),
        in_specs=[
            pl.BlockSpec((None, bt, K), lambda b, t: (b, t, 0)),
            pl.BlockSpec((K, Np), lambda b, t: (0, 0)),
            pl.BlockSpec((bt, Np), lambda b, t: (t, 0)),   # PE not duplicated per batch
        ],
        out_specs=pl.BlockSpec((None, bt, Np), lambda b, t: (b, t, 0)),
        compiler_params=pltpu.CompilerParams(
            dimension_semantics=("parallel", "parallel"),
            vmem_limit_bytes=vmem_limit),
    )(feat, w, pe_pb)
    return out[:, :T2, :odim]


# ----------------------------------------------------------------------------
# Glue: channel-last im2col, block-diagonal stream-merged weights, PE table
# ----------------------------------------------------------------------------
def _im2col_3x3_s2(x):
    """x:(B,H,W,C) -> patches (B,Ho,Wo,9,C); tap order (kh,kw), C innermost."""
    B, H, W, C = x.shape
    Ho = (H - 3) // 2 + 1
    Wo = (W - 3) // 2 + 1
    taps = []
    for kh in range(3):
        for kw in range(3):
            taps.append(lax.slice(
                x, (0, kh, kw, 0),
                (B, kh + 2 * (Ho - 1) + 1, kw + 2 * (Wo - 1) + 1, C),
                (1, 2, 2, 1)))
    return jnp.stack(taps, axis=3), Ho, Wo


def _blockdiag_conv_params(ws, bs):
    """Merge S per-stream Conv2d weights into one block-diagonal matmul weight.

    ws[s]: (O, I, 3, 3) torch layout.  Returns
      W: (9*S*I, S*O) with K order (kh, kw, stream, cin); stream s occupies
         output columns [s*O, (s+1)*O).
      b: (S*O,)
    """
    S = len(ws)
    O, I, KH, KW = ws[0].shape
    W = jnp.zeros((KH, KW, S, I, S * O), jnp.float32)
    for s, w in enumerate(ws):
        w2 = jnp.transpose(w, (2, 3, 1, 0))           # (KH, KW, I, O)
        W = W.at[:, :, s, :, s * O:(s + 1) * O].set(w2)
    return W.reshape(KH * KW * S * I, S * O), jnp.concatenate(bs)


def make_positional_encoding(T, d_model):
    pos = jnp.arange(T, dtype=jnp.float32)[:, None]
    half = (d_model + 1) // 2
    div = jnp.exp(jnp.arange(half, dtype=jnp.float32) * 2.0
                  * (-math.log(10000.0) / d_model))
    ang = pos * div
    pe = jnp.zeros((T, d_model), dtype=jnp.float32)
    pe = pe.at[:, 0::2].set(jnp.sin(ang))
    pe = pe.at[:, 1::2].set(jnp.cos(ang[:, : d_model // 2]))
    return pe


# ----------------------------------------------------------------------------
# Parameters: raw (torch-layout) init and one-time hoisted preparation
# ----------------------------------------------------------------------------
def init_params(key, idim, odim):
    """Deterministic init mimicking torch default uniform(-1/sqrt(fan_in),..)."""
    F2 = (((idim - 1) // 2) - 1) // 2
    D = 4 * odim * F2
    params = {}
    ks = list(jax.random.split(key, 4 * 4 + 2))
    ki = iter(ks)

    def u(k, shape, fan_in):
        bnd = 1.0 / math.sqrt(fan_in)
        return jax.random.uniform(k, shape, jnp.float32, -bnd, bnd)

    for i in range(4):
        params[f"w1_{i}"] = u(next(ki), (odim, 1, 3, 3), 1 * 9)
        params[f"b1_{i}"] = u(next(ki), (odim,), 1 * 9)
        params[f"w2_{i}"] = u(next(ki), (odim, odim, 3, 3), odim * 9)
        params[f"b2_{i}"] = u(next(ki), (odim,), odim * 9)
    params["w_lin"] = u(next(ki), (odim, D), D)   # torch Linear weight (out,in)
    params["b_lin"] = u(next(ki), (odim,), D)
    return params


def prepare_params(params, idim, odim, T, *, n_streams=4):
    """One-time weight prep (outside the jitted per-call path): block-diag
    merges, layout reorders, sqrt(odim)/bias folding, casts, N padding."""
    S = n_streams
    F1 = (idim - 1) // 2
    F2 = (F1 - 1) // 2
    T1 = (T - 1) // 2
    T2 = (T1 - 1) // 2

    W1, b1 = _blockdiag_conv_params([params[f"w1_{i}"] for i in range(S)],
                                    [params[f"b1_{i}"] for i in range(S)])
    W2, b2 = _blockdiag_conv_params([params[f"w2_{i}"] for i in range(S)],
                                    [params[f"b2_{i}"] for i in range(S)])

    scale = math.sqrt(odim)
    Np = _round_up(odim, 128)
    # torch feature index: c*(S*F2) + s*F2 + f   ->  ours: f*(S*odim) + s*odim + c
    Wl = params["w_lin"].reshape(odim, odim, S, F2)              # (o, c, s, f)
    Wl = jnp.transpose(Wl, (3, 2, 1, 0)).reshape(F2 * S * odim, odim) * scale
    Wl = jnp.pad(Wl, ((0, 0), (0, Np - odim)))                   # lane-dense N
    pe_pb = make_positional_encoding(T2, odim) + params["b_lin"][None, :] * scale
    pe_pb = jnp.pad(pe_pb, ((0, 0), (0, Np - odim)))

    return {
        "W1": W1.astype(jnp.float32), "b1": b1.astype(jnp.float32),
        "W2": W2.astype(jnp.bfloat16), "b2": b2.astype(jnp.float32),
        "Wl": Wl.astype(jnp.bfloat16), "pe_pb": pe_pb.astype(jnp.float32),
    }


# ----------------------------------------------------------------------------
# Forward
# ----------------------------------------------------------------------------
def conv2d_subsampling_fused15_forward(x_streams, x_mask, prep, odim):
    """
    x_streams: (4, B, T, idim) -- the 4 feature streams the torch module zips
               against its 4 conv stacks.
    x_mask:    (B, 1, T) or None.
    Returns (y (B, T2, odim), subsampled mask).
    """
    S, B, T, idim = x_streams.shape
    assert S == 4

    # Channel-last (stream on the lane axis) so the im2col patch tensors are
    # consumed with pure reshapes -- no HBM relayout of the 9x-expanded data.
    x_cl = jnp.moveaxis(x_streams, 0, -1)                   # (B, T, idim, S)

    # ---- stage 1: 4x Conv2d(1,odim,3,2)+ReLU as ONE matmul (K = 9*S, f32) ----
    p1, T1, F1 = _im2col_3x3_s2(x_cl)                       # (B,T1,F1,9,S)
    p1 = p1.reshape(B * T1 * F1, 9 * S)                     # K order (kh,kw,s)
    h1 = fused_conv_matmul(p1, prep["W1"], prep["b1"],
                           compute_dtype=jnp.float32, out_dtype=jnp.bfloat16)
    # h1 cols = s*odim + c  (lane-dense stream-concatenated 4*odim)

    # ---- stage 2: 4x Conv2d(odim,odim,3,2)+ReLU as ONE matmul (bf16) ---------
    h1 = h1.reshape(B, T1, F1, S * odim)
    p2, T2, F2 = _im2col_3x3_s2(h1)                         # (B,T2,F2,9,S*odim)
    p2 = p2.reshape(B * T2 * F2, 9 * S * odim)              # K order (kh,kw,s,cin)
    h2 = fused_conv_matmul(p2, prep["W2"], prep["b2"],
                           compute_dtype=jnp.bfloat16, out_dtype=jnp.bfloat16)

    # ---- stage 3: Linear(4*odim*F2, odim) + PositionalEncoding ---------------
    feat = h2.reshape(B, T2, F2 * S * odim)                 # = f*(S*odim)+s*odim+c
    y = linear_pe(feat, prep["Wl"], prep["pe_pb"], odim)    # (B, T2, odim)
    # TODO(synk): PositionalEncoding dropout omitted (inference-mode identity).
    # TODO(synk): im2col / h1 patch materialization still happens in XLA;
    #   pulling it into the kernel via manual DMA of overlapping row windows
    #   (and fusing stage 1 into stage 2) is the remaining HBM-traffic win.

    if x_mask is None:
        return y, None
    return y, x_mask[:, :, :-2:2][:, :, :-2:2]


# ----------------------------------------------------------------------------
# Pure-JAX reference mirroring the torch module (sanity check only)
# ----------------------------------------------------------------------------
def _reference_forward(x_streams, x_mask, params, odim):
    S, B, T, idim = x_streams.shape
    outs = []
    for i in range(S):
        xi = x_streams[i][:, None, :, :]                         # NCHW
        h = lax.conv_general_dilated(xi, params[f"w1_{i}"], (2, 2), "VALID",
                                     dimension_numbers=("NCHW", "OIHW", "NCHW"),
                                     precision=lax.Precision.HIGHEST)
        h = jax.nn.relu(h + params[f"b1_{i}"][None, :, None, None])
        h = lax.conv_general_dilated(h, params[f"w2_{i}"], (2, 2), "VALID",
                                     dimension_numbers=("NCHW", "OIHW", "NCHW"),
                                     precision=lax.Precision.HIGHEST)
        h = jax.nn.relu(h + params[f"b2_{i}"][None, :, None, None])
        outs.append(h)                                           # (B,odim,T2,F2)
    x = jnp.concatenate(outs, axis=-1)                           # (B,odim,T2,4*F2)
    b, c, t, f = x.shape
    x = jnp.transpose(x, (0, 2, 1, 3)).reshape(b, t, c * f)
    y = jnp.einsum("btd,od->bto", x, params["w_lin"],
                   precision=lax.Precision.HIGHEST) + params["b_lin"]
    y = y * math.sqrt(odim) + make_positional_encoding(t, odim)[None]
    mask = None if x_mask is None else x_mask[:, :, :-2:2][:, :, :-2:2]
    return y, mask


# ----------------------------------------------------------------------------
if __name__ == "__main__":
    B, T, idim, odim = 2, 29, 29, 32
    key = jax.random.PRNGKey(0)
    k_in, k_par = jax.random.split(key)

    x_streams = jax.random.normal(k_in, (4, B, T, idim), dtype=jnp.float32)
    x_mask = jnp.ones((B, 1, T), dtype=bool)
    params = init_params(k_par, idim, odim)

    # Hoisted, one-time weight preparation (outside the jitted per-call path).
    prep = prepare_params(params, idim, odim, T)

    fwd = jax.jit(functools.partial(conv2d_subsampling_fused15_forward, odim=odim))
    y, m = fwd(x_streams, x_mask, prep)
    y = jax.block_until_ready(y)
    m = jax.block_until_ready(m)

    T2 = (((T - 1) // 2) - 1) // 2
    assert y.shape == (B, T2, odim), y.shape
    assert m.shape == (B, 1, T2), m.shape
    assert bool(jnp.all(jnp.isfinite(y)))

    # Sanity check against the pure-JAX reference (bf16 matmul noise expected).
    y_ref, m_ref = _reference_forward(x_streams, x_mask, params, odim)
    rel_err = float(jnp.sqrt(jnp.sum((y - y_ref) ** 2) /
                             (jnp.sum(y_ref ** 2) + 1e-12)))
    assert rel_err < 5e-2, rel_err
    assert bool(jnp.all(m == m_ref))

    print("KERNEL_OK")
</pallas_src>

<mosaic_0001>
module attributes {stable_mosaic.version = 11 : i64} {
  func.func @_mm_bias_relu_kernel(%arg0: i32, %arg1: memref<256x36xf32, #tpu.memory_space<vmem>>, %arg2: memref<36x128xf32, #tpu.memory_space<vmem>>, %arg3: memref<1x128xf32, #tpu.memory_space<vmem>>, %arg4: memref<256x128xbf16, #tpu.memory_space<vmem>>) attributes {dimension_semantics = [#tpu.dimension_semantics<parallel>], iteration_bounds = array<i64: 2>, scalar_prefetch = 0 : i64, scratch_operands = 0 : i64, tpu.core_type = #tpu.core_type<tc>, window_params = [{transform_indices = @transform_0, window_bounds = array<i64: 256, 36>}, {pipeline_mode = #tpu.pipeline_mode<synchronous>, transform_indices = @transform_1, window_bounds = array<i64: 36, 128>}, {pipeline_mode = #tpu.pipeline_mode<synchronous>, transform_indices = @transform_2, window_bounds = array<i64: 1, 128>}, {transform_indices = @transform_3, window_bounds = array<i64: 256, 128>}]} {
    %c0 = arith.constant 0 : index
    %c0_0 = arith.constant 0 : index
    %0 = vector.load %arg1[%c0, %c0_0] : memref<256x36xf32, #tpu.memory_space<vmem>>, vector<256x36xf32>
    %c0_1 = arith.constant 0 : index
    %c0_2 = arith.constant 0 : index
    %1 = vector.load %arg2[%c0_1, %c0_2] : memref<36x128xf32, #tpu.memory_space<vmem>>, vector<36x128xf32>
    %cst = arith.constant dense<0.000000e+00> : vector<256x128xf32>
    %2 = tpu.matmul %0, %1, %cst {dimension_numbers = #tpu.dot_dimension_numbers<[1], [0], [0], [1], [0, 0, 1, 1], [], []>} : vector<256x36xf32>, vector<36x128xf32>, vector<256x128xf32> -> vector<256x128xf32>
    %c0_3 = arith.constant 0 : index
    %c0_4 = arith.constant 0 : index
    %3 = vector.load %arg3[%c0_3, %c0_4] : memref<1x128xf32, #tpu.memory_space<vmem>>, vector<1x128xf32>
    %4 = vector.broadcast %3 : vector<1x128xf32> to vector<256x128xf32>
    %5 = arith.addf %2, %4 : vector<256x128xf32>
    %cst_5 = arith.constant 0.000000e+00 : f32
    %6 = vector.broadcast %cst_5 : f32 to vector<256x128xf32>
    %7 = arith.maximumf %5, %6 : vector<256x128xf32>
    %8 = arith.truncf %7 : vector<256x128xf32> to vector<256x128xbf16>
    %c0_6 = arith.constant 0 : index
    %c0_7 = arith.constant 0 : index
    %9 = vector.load %arg4[%c0_6, %c0_7] : memref<256x128xbf16, #tpu.memory_space<vmem>>, vector<256x128xbf16>
    tpu.vector_store %arg4[%c0_6, %c0_7], %8 {strides = array<i32>} : memref<256x128xbf16, #tpu.memory_space<vmem>>, vector<256x128xbf16>,
    return
  }
  func.func @transform_0(%arg0: i32) -> (i32, i32) {
    %c0_i32 = arith.constant 0 : i32
    %c0_i32_0 = arith.constant 0 : i32
    return %arg0, %c0_i32 : i32, i32
  }
  func.func @transform_1(%arg0: i32) -> (i32, i32) {
    %c0_i32 = arith.constant 0 : i32
    %c0_i32_0 = arith.constant 0 : i32
    %c0_i32_1 = arith.constant 0 : i32
    return %c0_i32, %c0_i32_0 : i32, i32
  }
  func.func @transform_2(%arg0: i32) -> (i32, i32) {
    %c0_i32 = arith.constant 0 : i32
    %c0_i32_0 = arith.constant 0 : i32
    %c0_i32_1 = arith.constant 0 : i32
    return %c0_i32, %c0_i32_0 : i32, i32
  }
  func.func @transform_3(%arg0: i32) -> (i32, i32) {
    %c0_i32 = arith.constant 0 : i32
    %c0_i32_0 = arith.constant 0 : i32
    return %arg0, %c0_i32 : i32, i32
  }
}

module attributes {stable_mosaic.version = 11 : i64} {
  func.func @_mm_bias_relu_kernel(%arg0: i32, %arg1: memref<80x1152xbf16, #tpu.memory_space<vmem>>, %arg2: memref<1152x128xbf16, #tpu.memory_space<vmem>>, %arg3: memref<1x128xf32, #tpu.memory_space<vmem>>, %arg4: memref<80x128xbf16, #tpu.memory_space<vmem>>) attributes {dimension_semantics = [#tpu.dimension_semantics<parallel>], iteration_bounds = array<i64: 1>, scalar_prefetch = 0 : i64, scratch_operands = 0 : i64, tpu.core_type = #tpu.core_type<tc>, window_params = [{transform_indices = @transform_0, window_bounds = array<i64: 80, 1152>}, {pipeline_mode = #tpu.pipeline_mode<synchronous>, transform_indices = @transform_1, window_bounds = array<i64: 1152, 128>}, {pipeline_mode = #tpu.pipeline_mode<synchronous>, transform_indices = @transform_2, window_bounds = array<i64: 1, 128>}, {transform_indices = @transform_3, window_bounds = array<i64: 80, 128>}]} {
    %c0 = arith.constant 0 : index
    %c0_0 = arith.constant 0 : index
    %0 = vector.load %arg1[%c0, %c0_0] : memref<80x1152xbf16, #tpu.memory_space<vmem>>, vector<80x1152xbf16>
    %c0_1 = arith.constant 0 : index
    %c0_2 = arith.constant 0 : index
    %1 = vector.load %arg2[%c0_1, %c0_2] : memref<1152x128xbf16, #tpu.memory_space<vmem>>, vector<1152x128xbf16>
    %cst = arith.constant dense<0.000000e+00> : vector<80x128xf32>
    %2 = tpu.matmul %0, %1, %cst {dimension_numbers = #tpu.dot_dimension_numbers<[1], [0], [0], [1], [0, 0, 1, 1], [], []>} : vector<80x1152xbf16>, vector<1152x128xbf16>, vector<80x128xf32> -> vector<80x128xf32>
    %c0_3 = arith.constant 0 : index
    %c0_4 = arith.constant 0 : index
    %3 = vector.load %arg3[%c0_3, %c0_4] : memref<1x128xf32, #tpu.memory_space<vmem>>, vector<1x128xf32>
    %4 = vector.broadcast %3 : vector<1x128xf32> to vector<80x128xf32>
    %5 = arith.addf %2, %4 : vector<80x128xf32>
    %cst_5 = arith.constant 0.000000e+00 : f32
    %6 = vector.broadcast %cst_5 : f32 to vector<80x128xf32>
    %7 = arith.maximumf %5, %6 : vector<80x128xf32>
    %8 = arith.truncf %7 : vector<80x128xf32> to vector<80x128xbf16>
    %c0_6 = arith.constant 0 : index
    %c0_7 = arith.constant 0 : index
    %9 = vector.load %arg4[%c0_6, %c0_7] : memref<80x128xbf16, #tpu.memory_space<vmem>>, vector<80x128xbf16>
    tpu.vector_store %arg4[%c0_6, %c0_7], %8 {strides = array<i32>} : memref<80x128xbf16, #tpu.memory_space<vmem>>, vector<80x128xbf16>,
    return
  }
  func.func @transform_0(%arg0: i32) -> (i32, i32) {
    %c0_i32 = arith.constant 0 : i32
    %c0_i32_0 = arith.constant 0 : i32
    return %arg0, %c0_i32 : i32, i32
  }
  func.func @transform_1(%arg0: i32) -> (i32, i32) {
    %c0_i32 = arith.constant 0 : i32
    %c0_i32_0 = arith.constant 0 : i32
    %c0_i32_1 = arith.constant 0 : i32
    return %c0_i32, %c0_i32_0 : i32, i32
  }
  func.func @transform_2(%arg0: i32) -> (i32, i32) {
    %c0_i32 = arith.constant 0 : i32
    %c0_i32_0 = arith.constant 0 : i32
    %c0_i32_1 = arith.constant 0 : i32
    return %c0_i32, %c0_i32_0 : i32, i32
  }
  func.func @transform_3(%arg0: i32) -> (i32, i32) {
    %c0_i32 = arith.constant 0 : i32
    %c0_i32_0 = arith.constant 0 : i32
    return %arg0, %c0_i32 : i32, i32
  }
}

module attributes {stable_mosaic.version = 11 : i64} {
  func.func @_linear_pe_kernel(%arg0: i32, %arg1: i32, %arg2: memref<1x8x768xbf16, #tpu.memory_space<vmem>>, %arg3: memref<768x128xbf16, #tpu.memory_space<vmem>>, %arg4: memref<8x128xf32, #tpu.memory_space<vmem>>, %arg5: memref<1x8x128xf32, #tpu.memory_space<vmem>>) attributes {dimension_semantics = [#tpu.dimension_semantics<parallel>, #tpu.dimension_semantics<parallel>], iteration_bounds = array<i64: 2, 1>, scalar_prefetch = 0 : i64, scratch_operands = 0 : i64, tpu.core_type = #tpu.core_type<tc>, window_params = [{transform_indices = @transform_0, window_bounds = array<i64: 1, 8, 768>}, {pipeline_mode = #tpu.pipeline_mode<synchronous>, transform_indices = @transform_1, window_bounds = array<i64: 768, 128>}, {transform_indices = @transform_2, window_bounds = array<i64: 8, 128>}, {transform_indices = @transform_3, window_bounds = array<i64: 1, 8, 128>}]} {
    %c0 = arith.constant 0 : index
    %c0_0 = arith.constant 0 : index
    %c0_1 = arith.constant 0 : index
    %0 = vector.load %arg2[%c0, %c0_0, %c0_1] : memref<1x8x768xbf16, #tpu.memory_space<vmem>>, vector<1x8x768xbf16>
    %1 = vector.shape_cast %0 : vector<1x8x768xbf16> to vector<8x768xbf16>
    %c0_2 = arith.constant 0 : index
    %c0_3 = arith.constant 0 : index
    %2 = vector.load %arg3[%c0_2, %c0_3] : memref<768x128xbf16, #tpu.memory_space<vmem>>, vector<768x128xbf16>
    %cst = arith.constant dense<0.000000e+00> : vector<8x128xf32>
    %3 = tpu.matmul %1, %2, %cst {dimension_numbers = #tpu.dot_dimension_numbers<[1], [0], [0], [1], [0, 0, 1, 1], [], []>} : vector<8x768xbf16>, vector<768x128xbf16>, vector<8x128xf32> -> vector<8x128xf32>
    %c0_4 = arith.constant 0 : index
    %c0_5 = arith.constant 0 : index
    %4 = vector.load %arg4[%c0_4, %c0_5] : memref<8x128xf32, #tpu.memory_space<vmem>>, vector<8x128xf32>
    %5 = arith.addf %3, %4 : vector<8x128xf32>
    %c0_6 = arith.constant 0 : index
    %c0_7 = arith.constant 0 : index
    %c0_8 = arith.constant 0 : index
    %6 = vector.load %arg5[%c0_6, %c0_7, %c0_8] : memref<1x8x128xf32, #tpu.memory_space<vmem>>, vector<1x8x128xf32>
    %7 = vector.shape_cast %6 : vector<1x8x128xf32> to vector<8x128xf32>
    %8 = vector.shape_cast %5 : vector<8x128xf32> to vector<1x8x128xf32>
    tpu.vector_store %arg5[%c0_6, %c0_7, %c0_8], %8 {strides = array<i32>} : memref<1x8x128xf32, #tpu.memory_space<vmem>>, vector<1x8x128xf32>,
    return
  }
  func.func @transform_0(%arg0: i32, %arg1: i32) -> (i32, i32, i32) {
    %c0_i32 = arith.constant 0 : i32
    %c0_i32_0 = arith.constant 0 : i32
    return %arg0, %arg1, %c0_i32 : i32, i32, i32
  }
  func.func @transform_1(%arg0: i32, %arg1: i32) -> (i32, i32) {
    %c0_i32 = arith.constant 0 : i32
    %c0_i32_0 = arith.constant 0 : i32
    %c0_i32_1 = arith.constant 0 : i32
    return %c0_i32, %c0_i32_0 : i32, i32
  }
  func.func @transform_2(%arg0: i32, %arg1: i32) -> (i32, i32) {
    %c0_i32 = arith.constant 0 : i32
    %c0_i32_0 = arith.constant 0 : i32
    return %arg1, %c0_i32 : i32, i32
  }
  func.func @transform_3(%arg0: i32, %arg1: i32) -> (i32, i32, i32) {
    %c0_i32 = arith.constant 0 : i32
    %c0_i32_0 = arith.constant 0 : i32
    return %arg0, %arg1, %c0_i32 : i32, i32, i32
  }
}

</mosaic_0001>

<bundles_post_ra>
// kernel: conv2d_subsampling_fused15_forward.3
= control target key start
LH: loop header
LB: loop body
LE: loop exit
PB: predicated region body
PF: predicated region fallthrough
CT: control target
= control target key end

     0   :  { %s772_s12 = smov 0   ;;  %s929_s0 = inlined_call_operand.vmem [shape: f32[512,36], index: 0, kind: input, shape index: {}]   ;;  %s930_s1 = inlined_call_operand.vmem [shape: f32[36,128], index: 1, kind: input, shape index: {}]   ;;  %s931_s2 = inlined_call_operand.vmem [shape: f32[1,128], index: 2, kind: input, shape index: {}]   ;;  %s932_s3 = inlined_call_operand.vmem [shape: bf16[512,128], index: 3, kind: output, shape index: {}]  }
   0x1 LB: > { %s581_s13 = sadd.s32 4294967295, %s750_s12   ;;  %p585_p0 = scmp.ge.s32.totalorder %s750_s12, 1  ;;  %s750_s12 = sphi %s772_s12, %s13_s12  }
   0x2   : > { %p138_p1 = scmp.lt.s32.totalorder %s750_s12, 3 }
   0x4   : > { %p139_p2 = pnand %p585_p0, %p138_p1 }
   0x5   : > { %s586_s18 = sshll.u32 (!%p139_p2), %s581_s13, 5 }
   0x6   : > { %142 = sbr.rel (%p139_p2) target bundleno = 219 (0xdb), region = 32  ;;  %p163_p3 = scmp.lt.s32.totalorder (!%p139_p2), %s586_s18, 63 }
   0xb   : > { %v210_v0 = vld [vmem:[%s930_s1 + $0x20] sm:$0xf]  ;;  %vm312_vm0 = vcmask 1043456   ;;  %v209_v1 = vld [vmem:[%s930_s1 + $0x18] sm:$0xff]  ;;  %v208_v2 = vld [vmem:[%s930_s1 + $0x10] sm:$0xff]  ;;  %s934_s18 = smov (!%p163_p3, %s586_s18), 63 }
   0xc   : > { %590 = vmatpush.msk.msra.mxu0 %vm312_vm0, %v210_v0  ;;  %720 = vmatpush.msk.msra.mxu1 %vm312_vm0, %v210_v0  ;;  %v207_v3 = vld [vmem:[%s930_s1 + $0x8] sm:$0xff]  ;;  %s587_s23 = sshll.u32 %s934_s18, 3  ;;  %v206_v4 = vld [vmem:[%s930_s1] sm:$0xff]  ;;  %vm215_vm1 = vcmask 293888   ;;  %s589_s4 = sshll.u32 %s934_s18, 2 }
   0xd   : > { %721 = vmatpush.msk.msra.mxu2 %vm312_vm0, %v210_v0  ;;  %722 = vmatpush.msk.msra.mxu3 %vm312_vm0, %v210_v0  ;;  %s801_s28 = scalar_lea.vmem %s929_s0, %s587_s23  ;;  %v870_v39 = vld [vmem:[%s931_s2] ss:$0 sm:$0xff]  ;;  %s880_s7 = scalar_lea.vmem %s932_s3, %s589_s4 }
   0xe   : > { %328 = vmatpush.msra.mxu0 %v209_v1  ;;  %723 = vmatpush.msra.mxu1 %v209_v1  ;;  %v174_v5 = vld [vmem:[%s801_s28] sm:$0xff]  ;;  %v175_v9 = vld [vmem:[%s801_s28 + $0x8] sm:$0xff]  ;;  %v176_v13 = vld [vmem:[%s801_s28 + $0x10] sm:$0xff] }
   0xf   : > { %724 = vmatpush.msra.mxu2 %v209_v1  ;;  %725 = vmatpush.msra.mxu3 %v209_v1  ;;  %v182_v6 = vld [vmem:[%s801_s28 + $0x40] sm:$0xff]  ;;  %v183_v10 = vld [vmem:[%s801_s28 + $0x48] sm:$0xff]  ;;  %v184_v14 = vld [vmem:[%s801_s28 + $0x50] sm:$0xff] }
  0x10   : > { %329 = vmatpush.msra.mxu0 %v208_v2  ;;  %726 = vmatpush.msra.mxu1 %v208_v2  ;;  %v190_v7 = vld [vmem:[%s801_s28 + $0x80] sm:$0xff]  ;;  %v191_v11 = vld [vmem:[%s801_s28 + $0x88] sm:$0xff]  ;;  %v192_v15 = vld [vmem:[%s801_s28 + $0x90] sm:$0xff] }
  0x11   : > { %727 = vmatpush.msra.mxu2 %v208_v2  ;;  %728 = vmatpush.msra.mxu3 %v208_v2  ;;  %v198_v8 = vld [vmem:[%s801_s28 + $0xc0] sm:$0xff]  ;;  %v199_v12 = vld [vmem:[%s801_s28 + $0xc8] sm:$0xff]  ;;  %v200_v16 = vld [vmem:[%s801_s28 + $0xd0] sm:$0xff] }
  0x12   : > { %330 = vmatpush.msra.mxu0 %v207_v3  ;;  %729 = vmatpush.msra.mxu1 %v207_v3  ;;  %v177_v17 = vld [vmem:[%s801_s28 + $0x18] sm:$0xff]  ;;  %v178_v21 = vld [vmem:[%s801_s28 + $0x20] sm:$0xff]  ;;  %v179_v25 = vld [vmem:[%s801_s28 + $0x28] sm:$0xff] }
  0x13   : > { %730 = vmatpush.msra.mxu2 %v207_v3  ;;  %731 = vmatpush.msra.mxu3 %v207_v3  ;;  %v185_v18 = vld [vmem:[%s801_s28 + $0x58] sm:$0xff]  ;;  %v186_v22 = vld [vmem:[%s801_s28 + $0x60] sm:$0xff]  ;;  %v187_v26 = vld [vmem:[%s801_s28 + $0x68] sm:$0xff] }
  0x14   : > { %331 = vmatpush.msra.mxu0 %v206_v4  ;;  %732 = vmatpush.msra.mxu1 %v206_v4  ;;  %v193_v19 = vld [vmem:[%s801_s28 + $0x98] sm:$0xff]  ;;  %v194_v23 = vld [vmem:[%s801_s28 + $0xa0] sm:$0xff]  ;;  %v195_v27 = vld [vmem:[%s801_s28 + $0xa8] sm:$0xff] }
  0x15   : > { %733 = vmatpush.msra.mxu2 %v206_v4  ;;  %734 = vmatpush.msra.mxu3 %v206_v4  ;;  %v201_v20 = vld [vmem:[%s801_s28 + $0xd8] sm:$0xff]  ;;  %v202_v24 = vld [vmem:[%s801_s28 + $0xe0] sm:$0xff]  ;;  %v203_v28 = vld [vmem:[%s801_s28 + $0xe8] sm:$0xff] }
  0x16   : > { %591 = vmatmul.msk.f32.vlgmr.msra.gmra.mxu0 %vm215_vm1, %v174_v5  ;;  %599 = vmatmul.msk.f32.vlgmr.msra.gmra.mxu1 %vm215_vm1, %v182_v6  ;;  %v180_v29 = vld [vmem:[%s801_s28 + $0x30] sm:$0xff]  ;;  %v181_v33 = vld [vmem:[%s801_s28 + $0x38] sm:$0xff] }
  0x17   : > { %607 = vmatmul.msk.f32.vlgmr.msra.gmra.mxu2 %vm215_vm1, %v190_v7  ;;  %615 = vmatmul.msk.f32.vlgmr.msra.gmra.mxu3 %vm215_vm1, %v198_v8  ;;  %v188_v30 = vld [vmem:[%s801_s28 + $0x70] sm:$0xff]  ;;  %v189_v34 = vld [vmem:[%s801_s28 + $0x78] sm:$0xff] }
  0x18   : > { %v196_v31 = vld [vmem:[%s801_s28 + $0xb0] sm:$0xff]  ;;  %v197_v35 = vld [vmem:[%s801_s28 + $0xb8] sm:$0xff] }
  0x19   : > { %v204_v32 = vld [vmem:[%s801_s28 + $0xf0] sm:$0xff]  ;;  %v205_v36 = vld [vmem:[%s801_s28 + $0xf8] sm:$0xff] }
  0x1e   : > { %592 = vmatmul.msk.f32.gmra.mxu0 %vm215_vm1, %v175_v9  ;;  %600 = vmatmul.msk.f32.gmra.mxu1 %vm215_vm1, %v183_v10 }
  0x1f   : > { %608 = vmatmul.msk.f32.gmra.mxu2 %vm215_vm1, %v191_v11  ;;  %616 = vmatmul.msk.f32.gmra.mxu3 %vm215_vm1, %v199_v12 }
  0x26   : > { %593 = vmatmul.msk.f32.gmra.mxu0 %vm215_vm1, %v176_v13  ;;  %601 = vmatmul.msk.f32.gmra.mxu1 %vm215_vm1, %v184_v14 }
  0x27   : > { %609 = vmatmul.msk.f32.gmra.mxu2 %vm215_vm1, %v192_v15  ;;  %617 = vmatmul.msk.f32.gmra.mxu3 %vm215_vm1, %v200_v16 }
  0x2e   : > { %594 = vmatmul.msk.f32.gmra.mxu0 %vm215_vm1, %v177_v17  ;;  %602 = vmatmul.msk.f32.gmra.mxu1 %vm215_vm1, %v185_v18 }
  0x2f   : > { %610 = vmatmul.msk.f32.gmra.mxu2 %vm215_vm1, %v193_v19  ;;  %618 = vmatmul.msk.f32.gmra.mxu3 %vm215_vm1, %v201_v20 }
  0x36   : > { %595 = vmatmul.msk.f32.gmra.mxu0 %vm215_vm1, %v178_v21  ;;  %603 = vmatmul.msk.f32.gmra.mxu1 %vm215_vm1, %v186_v22 }
  0x37   : > { %611 = vmatmul.msk.f32.gmra.mxu2 %vm215_vm1, %v194_v23  ;;  %619 = vmatmul.msk.f32.gmra.mxu3 %vm215_vm1, %v202_v24 }
  0x3e   : > { %596 = vmatmul.msk.f32.gmra.mxu0 %vm215_vm1, %v179_v25  ;;  %604 = vmatmul.msk.f32.gmra.mxu1 %vm215_vm1, %v187_v26 }
  0x3f   : > { %612 = vmatmul.msk.f32.gmra.mxu2 %vm215_vm1, %v195_v27  ;;  %620 = vmatmul.msk.f32.gmra.mxu3 %vm215_vm1, %v203_v28 }
  0x46   : > { %597 = vmatmul.msk.f32.gmra.mxu0 %vm215_vm1, %v180_v29  ;;  %605 = vmatmul.msk.f32.gmra.mxu1 %vm215_vm1, %v188_v30 }
  0x47   : > { %613 = vmatmul.msk.f32.gmra.mxu2 %vm215_vm1, %v196_v31  ;;  %621 = vmatmul.msk.f32.gmra.mxu3 %vm215_vm1, %v204_v32 }
  0x4e   : > { %598 = vmatmul.msk.f32.gmra.mxu0 %vm215_vm1, %v181_v33  ;;  %606 = vmatmul.msk.f32.gmra.mxu1 %vm215_vm1, %v189_v34 }
  0x4f   : > { %614 = vmatmul.msk.f32.gmra.mxu2 %vm215_vm1, %v197_v35  ;;  %622 = vmatmul.msk.f32.gmra.mxu3 %vm215_vm1, %v205_v36 }
  0x93   : > { %v333_v37 = vpop.f32.mrf.mxu0  ;;  %v357_v38 = vpop.f32.mrf.mxu1 }
  0x94   : > { %v334_v40 = vadd.f32 %v870_v39, %v333_v37  ;;  %v358_v41 = vadd.f32 %v870_v39, %v357_v38 }
  0x96   : > { %v429_v48 = vmax.f32 %v334_v40, 0.0  ;;  %v437_v49 = vmax.f32 %v358_v41, 0.0 }
  0x9a   : > { %v381_v42 = vpop.f32.mrf.mxu2  ;;  %v405_v43 = vpop.f32.mrf.mxu3 }
  0x9b   : > { %v336_v44 = vpop.f32.mrf.mxu0  ;;  %v360_v45 = vpop.f32.mrf.mxu1  ;;  %v382_v54 = vadd.f32 %v870_v39, %v381_v42  ;;  %v406_v55 = vadd.f32 %v870_v39, %v405_v43 }
  0x9c   : > { %v337_v46 = vadd.f32 %v870_v39, %v336_v44  ;;  %v361_v47 = vadd.f32 %v870_v39, %v360_v45 }
  0x9d   : > { %v445_v62 = vmax.f32 %v382_v54, 0.0  ;;  %v453_v63 = vmax.f32 %v406_v55, 0.0 }
  0x9e   : > { %v430_v50 = vmax.f32 %v337_v46, 0.0  ;;  %v438_v51 = vmax.f32 %v361_v47, 0.0 }
  0xa0   : > { %v628_v52 = vpack.c.bf16 %v430_v50, %v429_v48  ;;  %v648_v53 = vpack.c.bf16 %v438_v51, %v437_v49 }
  0xa2   : > { %629 = vst [vmem:[%s880_s7] sm:$0xff] %v628_v52   ;;  %v384_v56 = vpop.f32.mrf.mxu2  ;;  %v408_v57 = vpop.f32.mrf.mxu3 }
  0xa3   : > { %708 = vst [vmem:[%s880_s7 + $0x20] sm:$0xff] %v648_v53   ;;  %v385_v58 = vadd.f32 %v870_v39, %v384_v56  ;;  %v409_v59 = vadd.f32 %v870_v39, %v408_v57  ;;  %v339_v60 = vpop.f32.mrf.mxu0  ;;  %v363_v61 = vpop.f32.mrf.mxu1 }
  0xa4   : > { %v340_v4 = vadd.f32 %v870_v39, %v339_v60  ;;  %v364_v5 = vadd.f32 %v870_v39, %v363_v61 }
  0xa5   : > { %v446_v0 = vmax.f32 %v385_v58, 0.0  ;;  %v454_v1 = vmax.f32 %v409_v59, 0.0 }
  0xa6   : > { %v431_v12 = vmax.f32 %v340_v4, 0.0  ;;  %v439_v13 = vmax.f32 %v364_v5, 0.0 }
  0xa7   : > { %v668_v2 = vpack.c.bf16 %v446_v0, %v445_v62  ;;  %v688_v3 = vpack.c.bf16 %v454_v1, %v453_v63 }
  0xa9   : > { %712 = vst [vmem:[%s880_s7 + $0x40] sm:$0xff] %v668_v2  }
  0xaa   : > { %716 = vst [vmem:[%s880_s7 + $0x60] sm:$0xff] %v688_v3   ;;  %v387_v6 = vpop.f32.mrf.mxu2  ;;  %v411_v7 = vpop.f32.mrf.mxu3 }
  0xab   : > { %v342_v8 = vpop.f32.mrf.mxu0  ;;  %v366_v9 = vpop.f32.mrf.mxu1  ;;  %v388_v18 = vadd.f32 %v870_v39, %v387_v6  ;;  %v412_v19 = vadd.f32 %v870_v39, %v411_v7 }
  0xac   : > { %v343_v10 = vadd.f32 %v870_v39, %v342_v8  ;;  %v367_v11 = vadd.f32 %v870_v39, %v366_v9 }
  0xad   : > { %v447_v26 = vmax.f32 %v388_v18, 0.0  ;;  %v455_v27 = vmax.f32 %v412_v19, 0.0 }
  0xae   : > { %v432_v14 = vmax.f32 %v343_v10, 0.0  ;;  %v440_v15 = vmax.f32 %v367_v11, 0.0 }
  0xb0   : > { %v633_v16 = vpack.c.bf16 %v432_v14, %v431_v12  ;;  %v653_v17 = vpack.c.bf16 %v440_v15, %v439_v13 }
  0xb2   : > { %705 = vst [vmem:[%s880_s7 + $0x8] sm:$0xff] %v633_v16   ;;  %v390_v20 = vpop.f32.mrf.mxu2  ;;  %v414_v21 = vpop.f32.mrf.mxu3 }
  0xb3   : > { %709 = vst [vmem:[%s880_s7 + $0x28] sm:$0xff] %v653_v17   ;;  %v391_v22 = vadd.f32 %v870_v39, %v390_v20  ;;  %v415_v23 = vadd.f32 %v870_v39, %v414_v21  ;;  %v345_v24 = vpop.f32.mrf.mxu0  ;;  %v369_v25 = vpop.f32.mrf.mxu1 }
  0xb4   : > { %v346_v32 = vadd.f32 %v870_v39, %v345_v24  ;;  %v370_v33 = vadd.f32 %v870_v39, %v369_v25 }
  0xb5   : > { %v448_v28 = vmax.f32 %v391_v22, 0.0  ;;  %v456_v29 = vmax.f32 %v415_v23, 0.0 }
  0xb6   : > { %v433_v41 = vmax.f32 %v346_v32, 0.0  ;;  %v441_v42 = vmax.f32 %v370_v33, 0.0 }
  0xb7   : > { %v673_v30 = vpack.c.bf16 %v448_v28, %v447_v26  ;;  %v693_v31 = vpack.c.bf16 %v456_v29, %v455_v27 }
  0xb9   : > { %713 = vst [vmem:[%s880_s7 + $0x48] sm:$0xff] %v673_v30  }
  0xba   : > { %717 = vst [vmem:[%s880_s7 + $0x68] sm:$0xff] %v693_v31   ;;  %v393_v34 = vpop.f32.mrf.mxu2  ;;  %v417_v35 = vpop.f32.mrf.mxu3 }
  0xbb   : > { %v348_v36 = vpop.f32.mrf.mxu0  ;;  %v372_v37 = vpop.f32.mrf.mxu1  ;;  %v394_v47 = vadd.f32 %v870_v39, %v393_v34  ;;  %v418_v48 = vadd.f32 %v870_v39, %v417_v35 }
  0xbc   : > { %v349_v38 = vadd.f32 %v870_v39, %v348_v36  ;;  %v373_v40 = vadd.f32 %v870_v39, %v372_v37 }
  0xbd   : > { %v449_v55 = vmax.f32 %v394_v47, 0.0  ;;  %v457_v56 = vmax.f32 %v418_v48, 0.0 }
  0xbe   : > { %v434_v43 = vmax.f32 %v349_v38, 0.0  ;;  %v442_v44 = vmax.f32 %v373_v40, 0.0 }
  0xc0   : > { %v638_v45 = vpack.c.bf16 %v434_v43, %v433_v41  ;;  %v658_v46 = vpack.c.bf16 %v442_v44, %v441_v42 }
  0xc2   : > { %706 = vst [vmem:[%s880_s7 + $0x10] sm:$0xff] %v638_v45   ;;  %v396_v49 = vpop.f32.mrf.mxu2  ;;  %v420_v50 = vpop.f32.mrf.mxu3 }
  0xc3   : > { %710 = vst [vmem:[%s880_s7 + $0x30] sm:$0xff] %v658_v46   ;;  %v397_v51 = vadd.f32 %v870_v39, %v396_v49  ;;  %v421_v52 = vadd.f32 %v870_v39, %v420_v50  ;;  %v351_v53 = vpop.f32.mrf.mxu0  ;;  %v375_v54 = vpop.f32.mrf.mxu1 }
  0xc4   : > { %v352_v61 = vadd.f32 %v870_v39, %v351_v53  ;;  %v376_v62 = vadd.f32 %v870_v39, %v375_v54 }
  0xc5   : > { %v450_v57 = vmax.f32 %v397_v51, 0.0  ;;  %v458_v58 = vmax.f32 %v421_v52, 0.0 }
  0xc6   : > { %v435_v5 = vmax.f32 %v352_v61, 0.0  ;;  %v443_v6 = vmax.f32 %v376_v62, 0.0 }
  0xc7   : > { %v678_v59 = vpack.c.bf16 %v450_v57, %v449_v55  ;;  %v698_v60 = vpack.c.bf16 %v458_v58, %v457_v56 }
  0xc9   : > { %714 = vst [vmem:[%s880_s7 + $0x50] sm:$0xff] %v678_v59  }
  0xca   : > { %718 = vst [vmem:[%s880_s7 + $0x70] sm:$0xff] %v698_v60   ;;  %v399_v63 = vpop.f32.mrf.mxu2  ;;  %v423_v0 = vpop.f32.mrf.mxu3 }
  0xcb   : > { %v354_v1 = vpop.f32.mrf.mxu0  ;;  %v378_v2 = vpop.f32.mrf.mxu1  ;;  %v400_v11 = vadd.f32 %v870_v39, %v399_v63  ;;  %v424_v12 = vadd.f32 %v870_v39, %v423_v0 }
  0xcc   : > { %v355_v3 = vadd.f32 %v870_v39, %v354_v1  ;;  %v379_v4 = vadd.f32 %v870_v39, %v378_v2 }
  0xcd   : > { %v451_v17 = vmax.f32 %v400_v11, 0.0  ;;  %v459_v18 = vmax.f32 %v424_v12, 0.0 }
  0xce   : > { %v436_v7 = vmax.f32 %v355_v3, 0.0  ;;  %v444_v8 = vmax.f32 %v379_v4, 0.0 }
  0xd0   : > { %v643_v9 = vpack.c.bf16 %v436_v7, %v435_v5  ;;  %v663_v10 = vpack.c.bf16 %v444_v8, %v443_v6 }
  0xd2   : > { %707 = vst [vmem:[%s880_s7 + $0x18] sm:$0xff] %v643_v9   ;;  %v402_v13 = vpop.f32.mrf.mxu2  ;;  %v426_v14 = vpop.f32.mrf.mxu3 }
  0xd3   : > { %711 = vst [vmem:[%s880_s7 + $0x38] sm:$0xff] %v663_v10   ;;  %v403_v15 = vadd.f32 %v870_v39, %v402_v13  ;;  %v427_v16 = vadd.f32 %v870_v39, %v426_v14 }
  0xd5   : > { %v452_v19 = vmax.f32 %v403_v15, 0.0  ;;  %v460_v20 = vmax.f32 %v427_v16, 0.0 }
  0xd7   : > { %v683_v21 = vpack.c.bf16 %v452_v19, %v451_v17  ;;  %v703_v22 = vpack.c.bf16 %v460_v20, %v459_v18 }
  0xd9   : > { %715 = vst [vmem:[%s880_s7 + $0x58] sm:$0xff] %v683_v21  }
  0xda   : > { %719 = vst [vmem:[%s880_s7 + $0x78] sm:$0xff] %v703_v22  }
  0xdb PF: > { %s13_s12 = sadd.s32 1, %s750_s12  }
  0xdc   : > { %p10_p4 = scmp.ge.s32.totalorder %s13_s12, 4  }
  0xde   :  { %12 = sbr.rel (!%p10_p4) target bundleno = 1 (0x1), region = 62 }

// kernel: conv2d_subsampling_fused15_forward.5
= control target key start
LH: loop header
LB: loop body
LE: loop exit
PB: predicated region body
PF: predicated region fallthrough
CT: control target
= control target key end

     0   :  { %s1123_s12 = smov 0   ;;  %s1125_s13 = smov 0   ;;  %s1316_s0 = inlined_call_operand.vmem [shape: bf16[2,8,768], index: 0, kind: input, shape index: {}]   ;;  %s1317_s1 = inlined_call_operand.vmem [shape: bf16[768,128], index: 1, kind: input, shape index: {}]   ;;  %s1318_s2 = inlined_call_operand.vmem [shape: f32[8,128], index: 2, kind: input, shape index: {}]   ;;  %s1319_s3 = inlined_call_operand.vmem [shape: f32[2,8,128], index: 3, kind: output, shape index: {}]  }
   0x1   :  { %s1127_s14 = smov 0  }
   0x2 LB: > { %s25_s15 = sadd.s32 1, %s1097_s13  ;;  %p809_p0 = scmp.ge.s32.totalorder %s1101_s14, 1  ;;  %s1101_s14 = sphi %s1127_s14, %s13_s14   ;;  %s1097_s13 = sphi %s1125_s13, %s1321_s13   ;;  %s1093_s12 = sphi %s1123_s12, %s1320_s12  }
   0x3   : > { %p27_p1 = scmp.ge.s32.totalorder %s25_s15, 2  ;;  %p166_p2 = scmp.lt.s32.totalorder %s1101_s14, 3 }
   0x5   : > { %s1323_s15 = smov (%p27_p1, %s25_s15), 0  ;;  %p167_p3 = pnand %p809_p0, %p166_p2 }
   0x6   : > { %p200_p4 = scmp.lt.s32.totalorder (!%p167_p3), %s1093_s12, 1 }
   0x7   : > { %170 = sbr.rel (%p167_p3) target bundleno = 211 (0xd3), region = 32 }
   0xc   : > { %v1013_v0 = vld [vmem:[%s1317_s1 + $0x38] sm:$0xff]  ;;  %v1012_v2 = vld [vmem:[%s1317_s1 + $0x30] sm:$0xff]  ;;  %v1011_v8 = vld [vmem:[%s1317_s1 + $0x28] sm:$0xff]  ;;  %s1325_s12 = smov (!%p200_p4, %s1093_s12), 1 }
   0xd   : > { %v1021_v1 = vld [vmem:[%s1317_s1 + $0x78] sm:$0xff]  ;;  %629 = vmatpush.bf16.msra.mxu0 %v1013_v0  ;;  %v1020_v3 = vld [vmem:[%s1317_s1 + $0x70] sm:$0xff]  ;;  %v1019_v9 = vld [vmem:[%s1317_s1 + $0x68] sm:$0xff]  ;;  %s1054_s29 = smul.u32 24, %s1325_s12  ;;  %s811_s27 = sshll.u32 %s1325_s12, 3 }
   0xe   : > { %642 = vmatpush.bf16.msra.mxu1 %v1021_v1  ;;  %v1029_v4 = vld [vmem:[%s1317_s1 + $0xb8] sm:$0xff]  ;;  %v1028_v6 = vld [vmem:[%s1317_s1 + $0xb0] sm:$0xff]  ;;  %v1027_v10 = vld [vmem:[%s1317_s1 + $0xa8] sm:$0xff]  ;;  %s219_s30 = scalar_lea.vmem %s1319_s3, %s811_s27 }
   0xf   : > { %v1037_v5 = vld [vmem:[%s1317_s1 + $0xf8] sm:$0xff]  ;;  %655 = vmatpush.bf16.msra.mxu2 %v1029_v4  ;;  %v1036_v7 = vld [vmem:[%s1317_s1 + $0xf0] sm:$0xff]  ;;  %v1035_v11 = vld [vmem:[%s1317_s1 + $0xe8] sm:$0xff]  ;;  %s1217_s17 = scalar_lea.vmem %s1316_s0, %s1054_s29 }
  0x10   : > { %668 = vmatpush.bf16.msra.mxu3 %v1037_v5  ;;  %v1010_v12 = vld [vmem:[%s1317_s1 + $0x20] sm:$0xff]  ;;  %v1009_v16 = vld [vmem:[%s1317_s1 + $0x18] sm:$0xff]  ;;  %v1008_v20 = vld [vmem:[%s1317_s1 + $0x10] sm:$0xff] }
  0x11   : > { %630 = vmatpush.bf16.msra.mxu0 %v1012_v2  ;;  %v1018_v13 = vld [vmem:[%s1317_s1 + $0x60] sm:$0xff]  ;;  %v1017_v17 = vld [vmem:[%s1317_s1 + $0x58] sm:$0xff]  ;;  %v1016_v21 = vld [vmem:[%s1317_s1 + $0x50] sm:$0xff] }
  0x12   : > { %643 = vmatpush.bf16.msra.mxu1 %v1020_v3  ;;  %v1026_v14 = vld [vmem:[%s1317_s1 + $0xa0] sm:$0xff]  ;;  %v1025_v18 = vld [vmem:[%s1317_s1 + $0x98] sm:$0xff]  ;;  %v1024_v22 = vld [vmem:[%s1317_s1 + $0x90] sm:$0xff] }
  0x13   : > { %656 = vmatpush.bf16.msra.mxu2 %v1028_v6  ;;  %v1034_v15 = vld [vmem:[%s1317_s1 + $0xe0] sm:$0xff]  ;;  %v1033_v19 = vld [vmem:[%s1317_s1 + $0xd8] sm:$0xff]  ;;  %v1032_v23 = vld [vmem:[%s1317_s1 + $0xd0] sm:$0xff] }
  0x14   : > { %669 = vmatpush.bf16.msra.mxu3 %v1036_v7  ;;  %v1007_v24 = vld [vmem:[%s1317_s1 + $0x8] sm:$0xff]  ;;  %v220_v26 = vld [vmem:[%s1217_s17] sm:$0xff]  ;;  %v1045_v34 = vld [vmem:[%s1317_s1 + $0x138] sm:$0xff] }
  0x15   : > { %631 = vmatpush.bf16.msra.mxu0 %v1011_v8  ;;  %v1015_v25 = vld [vmem:[%s1317_s1 + $0x48] sm:$0xff]  ;;  %v323_v29 = vunpack.c.l.b16 %v220_v26  ;;  %v324_v30 = vunpack.c.h.b16 %v220_v26  ;;  %v1006_v32 = vld [vmem:[%s1317_s1] sm:$0xff]  ;;  %v1053_v35 = vld [vmem:[%s1317_s1 + $0x178] sm:$0xff] }
  0x16   : > { %644 = vmatpush.bf16.msra.mxu1 %v1019_v9  ;;  %v1023_v27 = vld [vmem:[%s1317_s1 + $0x88] sm:$0xff]  ;;  %v1014_v33 = vld [vmem:[%s1317_s1 + $0x40] sm:$0xff]  ;;  %v1044_v42 = vld [vmem:[%s1317_s1 + $0x130] sm:$0xff] }
  0x17   : > { %657 = vmatpush.bf16.msra.mxu2 %v1027_v10  ;;  %v1031_v28 = vld [vmem:[%s1317_s1 + $0xc8] sm:$0xff]  ;;  %v1022_v36 = vld [vmem:[%s1317_s1 + $0x80] sm:$0xff]  ;;  %v329_v40 = vpack.c.b16 %v323_v29, %v323_v29  ;;  %v330_v41 = vpack.c.b16 %v324_v30, %v324_v30  ;;  %v1052_v43 = vld [vmem:[%s1317_s1 + $0x170] sm:$0xff] }
  0x18   : > { %670 = vmatpush.bf16.msra.mxu3 %v1035_v11  ;;  %v221_v31 = vld [vmem:[%s1217_s17 + $0x8] sm:$0xff]  ;;  %v1030_v37 = vld [vmem:[%s1317_s1 + $0xc0] sm:$0xff]  ;;  %v1041_v50 = vld [vmem:[%s1317_s1 + $0x118] sm:$0xff] }
  0x19   : > { %632 = vmatpush.bf16.msra.mxu0 %v1010_v12  ;;  %v325_v38 = vunpack.c.l.b16 %v221_v31  ;;  %v326_v39 = vunpack.c.h.b16 %v221_v31  ;;  %v1043_v46 = vld [vmem:[%s1317_s1 + $0x128] sm:$0xff]  ;;  %v1042_v48 = vld [vmem:[%s1317_s1 + $0x120] sm:$0xff]  ;;  %v1049_v51 = vld [vmem:[%s1317_s1 + $0x158] sm:$0xff] }
  0x1a   : > { %645 = vmatpush.bf16.msra.mxu1 %v1018_v13  ;;  %v1051_v47 = vld [vmem:[%s1317_s1 + $0x168] sm:$0xff]  ;;  %v1050_v49 = vld [vmem:[%s1317_s1 + $0x160] sm:$0xff]  ;;  %v1040_v52 = vld [vmem:[%s1317_s1 + $0x110] sm:$0xff] }
  0x1b   : > { %658 = vmatpush.bf16.msra.mxu2 %v1026_v14  ;;  %v331_v44 = vpack.c.b16 %v325_v38, %v325_v38  ;;  %v332_v45 = vpack.c.b16 %v326_v39, %v326_v39  ;;  %v1048_v53 = vld [vmem:[%s1317_s1 + $0x150] sm:$0xff]  ;;  %v1039_v54 = vld [vmem:[%s1317_s1 + $0x108] sm:$0xff]  ;;  %v1038_v59 = vld [vmem:[%s1317_s1 + $0x100] sm:$0xff] }
  0x1c   : > { %671 = vmatpush.bf16.msra.mxu3 %v1034_v15  ;;  %v1047_v55 = vld [vmem:[%s1317_s1 + $0x148] sm:$0xff]  ;;  %v222_v56 = vld [vmem:[%s1217_s17 + $0x10] sm:$0xff]  ;;  %v1046_v60 = vld [vmem:[%s1317_s1 + $0x140] sm:$0xff] }
  0x1d   : > { %633 = vmatpush.bf16.msra.mxu0 %v1009_v16  ;;  %v327_v57 = vunpack.c.l.b16 %v222_v56  ;;  %v328_v58 = vunpack.c.h.b16 %v222_v56  ;;  %v319_v5 = vld [vmem:[%s1318_s2] sm:$0xff] }
  0x1e   : > { %646 = vmatpush.bf16.msra.mxu1 %v1017_v17 }
  0x1f   : > { %659 = vmatpush.bf16.msra.mxu2 %v1025_v18  ;;  %v333_v61 = vpack.c.b16 %v327_v57, %v327_v57  ;;  %v334_v62 = vpack.c.b16 %v328_v58, %v328_v58 }
  0x20   : > { %672 = vmatpush.bf16.msra.mxu3 %v1033_v19 }
  0x21   : > { %634 = vmatpush.bf16.msra.mxu0 %v1008_v20 }
  0x22   : > { %647 = vmatpush.bf16.msra.mxu1 %v1016_v21 }
  0x23   : > { %660 = vmatpush.bf16.msra.mxu2 %v1024_v22 }
  0x24   : > { %673 = vmatpush.bf16.msra.mxu3 %v1032_v23 }
  0x25   : > { %635 = vmatpush.bf16.msra.mxu0 %v1007_v24 }
  0x26   : > { %648 = vmatpush.bf16.msra.mxu1 %v1015_v25 }
  0x27   : > { %661 = vmatpush.bf16.msra.mxu2 %v1023_v27 }
  0x28   : > { %674 = vmatpush.bf16.msra.mxu3 %v1031_v28 }
  0x29   : > { %636 = vmatpush.bf16.msra.mxu0 %v1006_v32 }
  0x2a   : > { %649 = vmatpush.bf16.msra.mxu1 %v1014_v33 }
  0x2b   : > { %662 = vmatpush.bf16.msra.mxu2 %v1022_v36 }
  0x2c   : > { %675 = vmatpush.bf16.msra.mxu3 %v1030_v37  ;;  %637 = vmatmul.bf16.vlgmr.msra.gmra.mxu0 %v329_v40 }
  0x2d   : > { %681 = vmatpush.bf16.msrb.mxu0 %v1045_v34  ;;  %650 = vmatmul.bf16.vlgmr.msra.gmra.mxu1 %v330_v41 }
  0x2e   : > { %694 = vmatpush.bf16.msrb.mxu1 %v1053_v35  ;;  %663 = vmatmul.bf16.vlgmr.msra.gmra.mxu2 %v331_v44 }
  0x2f   : > { %676 = vmatmul.bf16.vlgmr.msra.gmra.mxu3 %v332_v45 }
  0x31   : > { %682 = vmatpush.bf16.msrb.mxu0 %v1044_v42 }
  0x32   : > { %695 = vmatpush.bf16.msrb.mxu1 %v1052_v43 }
  0x35   : > { %683 = vmatpush.bf16.msrb.mxu0 %v1043_v46 }
  0x36   : > { %696 = vmatpush.bf16.msrb.mxu1 %v1051_v47 }
  0x39   : > { %684 = vmatpush.bf16.msrb.mxu0 %v1042_v48 }
  0x3a   : > { %697 = vmatpush.bf16.msrb.mxu1 %v1050_v49 }
  0x3d   : > { %685 = vmatpush.bf16.msrb.mxu0 %v1041_v50 }
  0x3e   : > { %698 = vmatpush.bf16.msrb.mxu1 %v1049_v51 }
  0x41   : > { %686 = vmatpush.bf16.msrb.mxu0 %v1040_v52 }
  0x42   : > { %699 = vmatpush.bf16.msrb.mxu1 %v1048_v53 }
  0x45   : > { %687 = vmatpush.bf16.msrb.mxu0 %v1039_v54 }
  0x46   : > { %700 = vmatpush.bf16.msrb.mxu1 %v1047_v55 }
  0x49   : > { %688 = vmatpush.bf16.msrb.mxu0 %v1038_v59 }
  0x4a   : > { %701 = vmatpush.bf16.msrb.mxu1 %v1046_v60 }
  0x4c   : > { %689 = vmatmul.bf16.vlgmr.msrb.gmra.mxu0 %v333_v61 }
  0x4d   : > { %702 = vmatmul.bf16.vlgmr.msrb.gmra.mxu1 %v334_v62 }
  0xa9   : > { %v638_v63 = vpop.f32.mrf.mxu0 }
  0xaa   : > { %v651_v0 = vpop.f32.mrf.mxu1  ;;  %v639_v6 = vadd.f32 %v638_v63, %v319_v5 }
  0xac   : > { %v652_v9 = vadd.f32 %v651_v0, %v639_v6 }
  0xb1   : > { %v640_v1 = vpop.f32.mrf.mxu0  ;;  %v664_v3 = vpop.f32.mrf.mxu2 }
  0xb2   : > { %v653_v2 = vpop.f32.mrf.mxu1  ;;  %v677_v4 = vpop.f32.mrf.mxu3  ;;  %v665_v10 = vadd.f32 %v664_v3, %v652_v9 }
  0xb4   : > { %v678_v11 = vadd.f32 %v677_v4, %v665_v10 }
  0xb9   : > { %v666_v7 = vpop.f32.mrf.mxu2 }
  0xba   : > { %v679_v8 = vpop.f32.mrf.mxu3 }
  0xc9   : > { %v690_v12 = vpop.f32.mrf.mxu0 }
  0xca   : > { %v703_v13 = vpop.f32.mrf.mxu1  ;;  %v691_v14 = vadd.f32 %v690_v12, %v678_v11 }
  0xcc   : > { %v704_v15 = vadd.f32 %v703_v13, %v691_v14 }
  0xce   : > { %707 = vst [vmem:[%s219_s30] sm:$0xff] %v704_v15 }
  0xd1   : > { %v692_v16 = vpop.f32.mrf.mxu0 }
  0xd2   : > { %v705_v17 = vpop.f32.mrf.mxu1 }
  0xd3 PF: > { %s13_s14 = sadd.s32 1, %s1101_s14   ;;  %s1320_s12 = smov %s1097_s13 }
  0xd4   : > { %p10_p5 = scmp.ge.s32.totalorder %s13_s14, 4   ;;  %s1321_s13 = smov %s1323_s15 }
  0xd6   :  { %12 = sbr.rel (!%p10_p5) target bundleno = 2 (0x2), region = 65 }

// kernel: conv2d_subsampling_fused15_forward.4
= control target key start
LH: loop header
LB: loop body
LE: loop exit
PB: predicated region body
PF: predicated region fallthrough
CT: control target
= control target key end

     0   :  { %s2429_s1 = inlined_call_operand.vmem [shape: bf16[1152,128], index: 1, kind: input, shape index: {}]   ;;  %s2430_s2 = inlined_call_operand.vmem [shape: f32[1,128], index: 2, kind: input, shape index: {}]   ;;  %s2431_s0 = inlined_call_operand.vmem [shape: bf16[80,1152], index: 0, kind: input, shape index: {}]   ;;  %s2432_s3 = inlined_call_operand.vmem [shape: bf16[80,128], index: 3, kind: output, shape index: {}]  }
   0x1   :  { %v1734_v0 = vld [vmem:[%s2429_s1 + $0x38] sm:$0xff]  ;;  %v1733_v1 = vld [vmem:[%s2429_s1 + $0x30] sm:$0xff]  ;;  %v1732_v4 = vld [vmem:[%s2429_s1 + $0x28] sm:$0xff] }
   0x2   :  { %874 = vmatpush.bf16.msra.mxu0 %v1734_v0  ;;  %1828 = vmatpush.bf16.msra.mxu1 %v1734_v0  ;;  %v1758_v2 = vld [vmem:[%s2429_s1 + $0xf8] sm:$0xff]  ;;  %v1757_v3 = vld [vmem:[%s2429_s1 + $0xf0] sm:$0xff]  ;;  %v1756_v5 = vld [vmem:[%s2429_s1 + $0xe8] sm:$0xff] }
   0x3   :  { %1829 = vmatpush.bf16.msra.mxu2 %v1734_v0  ;;  %976 = vmatpush.bf16.msra.mxu3 %v1758_v2  ;;  %v1731_v6 = vld [vmem:[%s2429_s1 + $0x20] sm:$0xff]  ;;  %v1730_v8 = vld [vmem:[%s2429_s1 + $0x18] sm:$0xff]  ;;  %v1729_v10 = vld [vmem:[%s2429_s1 + $0x10] sm:$0xff] }
   0x4   :  { %v1755_v7 = vld [vmem:[%s2429_s1 + $0xe0] sm:$0xff]  ;;  %v1754_v9 = vld [vmem:[%s2429_s1 + $0xd8] sm:$0xff]  ;;  %v1753_v11 = vld [vmem:[%s2429_s1 + $0xd0] sm:$0xff] }
   0x5   :  { %v1728_v12 = vld [vmem:[%s2429_s1 + $0x8] sm:$0xff]  ;;  %v1727_v14 = vld [vmem:[%s2429_s1] sm:$0xff]  ;;  %v1288_v17 = vld [vmem:[%s2431_s0 + $0x90] sm:$0xf] }
   0x6   :  { %875 = vmatpush.bf16.msra.mxu0 %v1733_v1  ;;  %1830 = vmatpush.bf16.msra.mxu1 %v1733_v1  ;;  %v1752_v13 = vld [vmem:[%s2429_s1 + $0xc8] sm:$0xff]  ;;  %v1216_v15 = vld [vmem:[%s2431_s0] sm:$0xf]  ;;  %v1686_v16 = vld [vmem:[%s2431_s0 + $0x20] sm:$0xf0] }
   0x7   :  { %1831 = vmatpush.bf16.msra.mxu2 %v1733_v1  ;;  %977 = vmatpush.bf16.msra.mxu3 %v1757_v3  ;;  %v1704_v18 = vld [vmem:[%s2431_s0 + $0xb0] sm:$0xf0]  ;;  %v1742_v19 = vld [vmem:[%s2429_s1 + $0x78] sm:$0xff]  ;;  %v1360_v20 = vld [vmem:[%s2431_s0 + $0x120] sm:$0xf]  ;;  %v1217_v24 = vor.u32 %v1686_v16, %v1216_v15 }
   0x8   :  { %v1722_v21 = vld [vmem:[%s2431_s0 + $0x140] sm:$0xf0]  ;;  %v1750_v22 = vld [vmem:[%s2429_s1 + $0xb8] sm:$0xff]  ;;  %v1289_v25 = vor.u32 %v1704_v18, %v1288_v17  ;;  %v1683_v28 = vld [vmem:[%s2431_s0 + $0xc] sm:$0xf] }
   0x9   :  { %v1766_v23 = vld [vmem:[%s2429_s1 + $0x138] sm:$0xff]  ;;  %v1361_v26 = vor.u32 %v1722_v21, %v1360_v20  ;;  %v1751_v27 = vld [vmem:[%s2429_s1 + $0xc0] sm:$0xff]  ;;  %v1226_v29 = vld [vmem:[%s2431_s0 + $0x2c] sm:$0xf0] }
   0xa   :  { %876 = vmatpush.bf16.msra.mxu0 %v1732_v4  ;;  %1832 = vmatpush.bf16.msra.mxu1 %v1732_v4  ;;  %v1741_v30 = vld [vmem:[%s2429_s1 + $0x70] sm:$0xff]  ;;  %v1790_v31 = vld [vmem:[%s2429_s1 + $0x1f8] sm:$0xff]  ;;  %v1229_v34 = vor.u32 %v1683_v28, %v1226_v29  ;;  %v1740_v35 = vld [vmem:[%s2429_s1 + $0x68] sm:$0xff] }
   0xb   :  { %1833 = vmatpush.bf16.msra.mxu2 %v1732_v4  ;;  %978 = vmatpush.bf16.msra.mxu3 %v1756_v5  ;;  %v1749_v32 = vld [vmem:[%s2429_s1 + $0xb0] sm:$0xff]  ;;  %v1748_v37 = vld [vmem:[%s2429_s1 + $0xa8] sm:$0xff]  ;;  %v1739_v39 = vld [vmem:[%s2429_s1 + $0x60] sm:$0xff] }
   0xc   :  { %v1765_v33 = vld [vmem:[%s2429_s1 + $0x130] sm:$0xff]  ;;  %v1764_v38 = vld [vmem:[%s2429_s1 + $0x128] sm:$0xff]  ;;  %v1747_v40 = vld [vmem:[%s2429_s1 + $0xa0] sm:$0xff] }
   0xd   :  { %v1789_v36 = vld [vmem:[%s2429_s1 + $0x1f0] sm:$0xff]  ;;  %v1763_v41 = vld [vmem:[%s2429_s1 + $0x120] sm:$0xff]  ;;  %v1252_v42 = vld [vmem:[%s2431_s0 + $0x48] sm:$0xf] }
   0xe   :  { %877 = vmatpush.bf16.msra.mxu0 %v1731_v6  ;;  %1834 = vmatpush.bf16.msra.mxu1 %v1731_v6  ;;  %v1695_v43 = vld [vmem:[%s2431_s0 + $0x68] sm:$0xf0]  ;;  %v1324_v44 = vld [vmem:[%s2431_s0 + $0xd8] sm:$0xf]  ;;  %v1713_v45 = vld [vmem:[%s2431_s0 + $0xf8] sm:$0xf0] }
   0xf   :  { %1835 = vmatpush.bf16.msra.mxu2 %v1731_v6  ;;  %979 = vmatpush.bf16.msra.mxu3 %v1755_v7  ;;  %v1738_v46 = vld [vmem:[%s2429_s1 + $0x58] sm:$0xff]  ;;  %v1253_v49 = vor.u32 %v1695_v43, %v1252_v42  ;;  %v1325_v50 = vor.u32 %v1713_v45, %v1324_v44  ;;  %v1692_v51 = vld [vmem:[%s2431_s0 + $0x54] sm:$0xf]  ;;  %v1788_v57 = vld [vmem:[%s2429_s1 + $0x1e8] sm:$0xff] }
  0x10   :  { %v1746_v47 = vld [vmem:[%s2429_s1 + $0x98] sm:$0xff]  ;;  %v1737_v53 = vld [vmem:[%s2429_s1 + $0x50] sm:$0xff]  ;;  %v1736_v58 = vld [vmem:[%s2429_s1 + $0x48] sm:$0xff] }
  0x11   :  { %v1762_v48 = vld [vmem:[%s2429_s1 + $0x118] sm:$0xff]  ;;  %v1745_v54 = vld [vmem:[%s2429_s1 + $0x90] sm:$0xff]  ;;  %v1744_v59 = vld [vmem:[%s2429_s1 + $0x88] sm:$0xff] }
  0x12   :  { %878 = vmatpush.bf16.msra.mxu0 %v1730_v8  ;;  %1836 = vmatpush.bf16.msra.mxu1 %v1730_v8  ;;  %v1262_v52 = vld [vmem:[%s2431_s0 + $0x74] sm:$0xf0]  ;;  %v1761_v55 = vld [vmem:[%s2429_s1 + $0x110] sm:$0xff]  ;;  %v1760_v60 = vld [vmem:[%s2429_s1 + $0x108] sm:$0xff] }
  0x13   :  { %1837 = vmatpush.bf16.msra.mxu2 %v1730_v8  ;;  %980 = vmatpush.bf16.msra.mxu3 %v1754_v9  ;;  %v1265_v56 = vor.u32 %v1692_v51, %v1262_v52  ;;  %v1743_v61 = vld [vmem:[%s2429_s1 + $0x80] sm:$0xff]  ;;  %v1224_v63 = vld [vmem:[%s2431_s0 + $0x8] sm:$0xf]  ;;  %v1687_v0 = vld [vmem:[%s2431_s0 + $0x28] sm:$0xf0] }
  0x14   :  { %v1735_v62 = vld [vmem:[%s2429_s1 + $0x40] sm:$0xff]  ;;  %v1782_v2 = vld [vmem:[%s2429_s1 + $0x1b8] sm:$0xff]  ;;  %v1218_v4 = vld [vmem:[%s2431_s0 + $0x24] sm:$0xf0]  ;;  %v1225_v9 = vor.u32 %v1687_v0, %v1224_v63 }
  0x15   :  { %v1759_v1 = vld [vmem:[%s2429_s1 + $0x100] sm:$0xff]  ;;  %v1774_v5 = vld [vmem:[%s2429_s1 + $0x178] sm:$0xff]  ;;  %v1232_v6 = vld [vmem:[%s2431_s0 + $0x10] sm:$0xf] }
  0x16   :  { %879 = vmatpush.bf16.msra.mxu0 %v1729_v10  ;;  %1838 = vmatpush.bf16.msra.mxu1 %v1729_v10  ;;  %v1682_v3 = vld [vmem:[%s2431_s0 + $0x4] sm:$0xf]  ;;  %v1688_v7 = vld [vmem:[%s2431_s0 + $0x30] sm:$0xf0]  ;;  %v1798_v8 = vld [vmem:[%s2429_s1 + $0x238] sm:$0xff] }
  0x17   :  { %1839 = vmatpush.bf16.msra.mxu2 %v1729_v10  ;;  %981 = vmatpush.bf16.msra.mxu3 %v1753_v11  ;;  %v1221_v10 = vor.u32 %v1682_v3, %v1218_v4  ;;  %v1233_v11 = vor.u32 %v1688_v7, %v1232_v6  ;;  %v1298_v15 = vld [vmem:[%s2431_s0 + $0xbc] sm:$0xf0]  ;;  %v1797_v16 = vld [vmem:[%s2429_s1 + $0x230] sm:$0xff]  ;;  %v1772_v20 = vld [vmem:[%s2429_s1 + $0x168] sm:$0xff] }
  0x18   :  { %v1787_v17 = vld [vmem:[%s2429_s1 + $0x1e0] sm:$0xff]  ;;  %v1796_v21 = vld [vmem:[%s2429_s1 + $0x228] sm:$0xff]  ;;  %v1254_v29 = vld [vmem:[%s2431_s0 + $0x6c] sm:$0xf0] }
  0x19   :  { %v1691_v28 = vld [vmem:[%s2431_s0 + $0x4c] sm:$0xf]  ;;  %v1785_v42 = vld [vmem:[%s2429_s1 + $0x1d0] sm:$0xff]  ;;  %v1304_v51 = vld [vmem:[%s2431_s0 + $0xa0] sm:$0xf] }
  0x1a   :  { %880 = vmatpush.bf16.msra.mxu0 %v1728_v12  ;;  %1840 = vmatpush.bf16.msra.mxu1 %v1728_v12  ;;  %v1769_v43 = vld [vmem:[%s2429_s1 + $0x150] sm:$0xff]  ;;  %v1776_v44 = vld [vmem:[%s2429_s1 + $0x188] sm:$0xff]  ;;  %v1706_v52 = vld [vmem:[%s2431_s0 + $0xc0] sm:$0xf0] }
  0x1b   :  { %1841 = vmatpush.bf16.msra.mxu2 %v1728_v12  ;;  %982 = vmatpush.bf16.msra.mxu3 %v1752_v13  ;;  %v1781_v12 = vld [vmem:[%s2429_s1 + $0x1b0] sm:$0xff]  ;;  %v1767_v63 = vld [vmem:[%s2429_s1 + $0x140] sm:$0xff]  ;;  %v1340_v4 = vld [vmem:[%s2431_s0 + $0xe8] sm:$0xf] }
  0x1c   :  { %v1773_v13 = vld [vmem:[%s2429_s1 + $0x170] sm:$0xff]  ;;  %v1332_v0 = vld [vmem:[%s2431_s0 + $0xe0] sm:$0xf] }
  0x1d   :  { %v1793_v45 = vld [vmem:[%s2429_s1 + $0x210] sm:$0xff]  ;;  %v1326_v3 = vld [vmem:[%s2431_s0 + $0xfc] sm:$0xf0] }
  0x1e   :  { %881 = vmatpush.bf16.msra.mxu0 %v1727_v14  ;;  %1842 = vmatpush.bf16.msra.mxu1 %v1727_v14 }
  0x1f   :  { %1843 = vmatpush.bf16.msra.mxu2 %v1727_v14  ;;  %983 = vmatpush.bf16.msra.mxu3 %v1751_v27  ;;  %v1701_v14 = vld [vmem:[%s2431_s0 + $0x9c] sm:$0xf]  ;;  %v1696_v27 = vld [vmem:[%s2431_s0 + $0x70] sm:$0xf0] }
  0x20   :  { %v1301_v18 = vor.u32 %v1701_v14, %v1298_v15  ;;  %v1723_v14 = vld [vmem:[%s2431_s0 + $0x148] sm:$0xf0]  ;;  %v1718_v15 = vld [vmem:[%s2431_s0 + $0x124] sm:$0xf] }
  0x21   :  { %882 = vmatmul.bf16.vlgmr.msra.gmra.mxu0 %v1217_v24  ;;  %892 = vmatmul.bf16.vlgmr.msra.gmra.mxu1 %v1289_v25  ;;  %v1771_v24 = vld [vmem:[%s2429_s1 + $0x160] sm:$0xff] }
  0x22   :  { %908 = vmatpush.bf16.msrb.mxu1 %v1742_v19  ;;  %1010 = vmatpush.bf16.msrb.mxu0 %v1766_v23  ;;  %v1780_v19 = vld [vmem:[%s2429_s1 + $0x1a8] sm:$0xff]  ;;  %v1779_v23 = vld [vmem:[%s2429_s1 + $0x1a0] sm:$0xff] }
  0x23   :  { %942 = vmatpush.bf16.msrb.mxu2 %v1750_v22  ;;  %1112 = vmatpush.bf16.msrb.mxu3 %v1790_v31  ;;  %v1786_v22 = vld [vmem:[%s2429_s1 + $0x1d8] sm:$0xff]  ;;  %v1795_v25 = vld [vmem:[%s2429_s1 + $0x220] sm:$0xff] }
  0x24   :  { %902 = vmatmul.bf16.vlgmr.msra.gmra.mxu2 %v1361_v26  ;;  %984 = vmatmul.bf16.vlgmr.msra.gmra.mxu3 %v1229_v34  ;;  %v1260_v26 = vld [vmem:[%s2431_s0 + $0x50] sm:$0xf]  ;;  %v1697_v31 = vld [vmem:[%s2431_s0 + $0x78] sm:$0xf0] }
  0x25   :  { %v1261_v34 = vor.u32 %v1696_v27, %v1260_v26  ;;  %v1689_v26 = vld [vmem:[%s2431_s0 + $0x38] sm:$0xf0]  ;;  %v1684_v27 = vld [vmem:[%s2431_s0 + $0x14] sm:$0xf] }
  0x26   :  { %909 = vmatpush.bf16.msrb.mxu1 %v1741_v30  ;;  %1011 = vmatpush.bf16.msrb.mxu0 %v1765_v33  ;;  %v1268_v30 = vld [vmem:[%s2431_s0 + $0x58] sm:$0xf] }
  0x27   :  { %943 = vmatpush.bf16.msrb.mxu2 %v1749_v32  ;;  %1113 = vmatpush.bf16.msrb.mxu3 %v1789_v36  ;;  %v1778_v32 = vld [vmem:[%s2429_s1 + $0x198] sm:$0xff]  ;;  %v1269_v36 = vor.u32 %v1697_v31, %v1268_v30  ;;  %v1690_v30 = vld [vmem:[%s2431_s0 + $0x40] sm:$0xf0] }
  0x28   :  { %v1770_v33 = vld [vmem:[%s2429_s1 + $0x158] sm:$0xff] }
  0x2a   :  { %910 = vmatpush.bf16.msrb.mxu1 %v1740_v35  ;;  %1012 = vmatpush.bf16.msrb.mxu0 %v1764_v38  ;;  %v1257_v35 = vor.u32 %v1691_v28, %v1254_v29  ;;  %v1334_v38 = vld [vmem:[%s2431_s0 + $0x104] sm:$0xf0]  ;;  %v1234_v28 = vld [vmem:[%s2431_s0 + $0x34] sm:$0xf0]  ;;  %v1248_v29 = vld [vmem:[%s2431_s0 + $0x20] sm:$0xf] }
  0x2b   :  { %944 = vmatpush.bf16.msrb.mxu2 %v1748_v37  ;;  %1114 = vmatpush.bf16.msrb.mxu3 %v1788_v57  ;;  %v1710_v37 = vld [vmem:[%s2431_s0 + $0xe4] sm:$0xf]  ;;  %v1370_v57 = vld [vmem:[%s2431_s0 + $0x14c] sm:$0xf0] }
  0x2e   :  { %911 = vmatpush.bf16.msrb.mxu1 %v1739_v39  ;;  %1013 = vmatpush.bf16.msrb.mxu0 %v1763_v41  ;;  %v1777_v39 = vld [vmem:[%s2429_s1 + $0x190] sm:$0xff]  ;;  %v1337_v41 = vor.u32 %v1710_v37, %v1334_v38  ;;  %v1276_v37 = vld [vmem:[%s2431_s0 + $0x60] sm:$0xf]  ;;  %v1698_v38 = vld [vmem:[%s2431_s0 + $0x80] sm:$0xf0] }
  0x2f   :  { %945 = vmatpush.bf16.msrb.mxu2 %v1747_v40  ;;  %1115 = vmatpush.bf16.msrb.mxu3 %v1787_v17  ;;  %v1794_v40 = vld [vmem:[%s2429_s1 + $0x218] sm:$0xff]  ;;  %v1376_v17 = vld [vmem:[%s2431_s0 + $0x130] sm:$0xf] }
  0x31   :  { %887 = vmatmul.bf16.gmra.mxu0 %v1253_v49  ;;  %897 = vmatmul.bf16.gmra.mxu1 %v1325_v50  ;;  %v1700_v49 = vld [vmem:[%s2431_s0 + $0x94] sm:$0xf]  ;;  %v1290_v50 = vld [vmem:[%s2431_s0 + $0xb4] sm:$0xf0] }
  0x32   :  { %912 = vmatpush.bf16.msrb.mxu1 %v1738_v46  ;;  %1014 = vmatpush.bf16.msrb.mxu0 %v1762_v48  ;;  %v1784_v46 = vld [vmem:[%s2429_s1 + $0x1c8] sm:$0xff]  ;;  %v1705_v48 = vld [vmem:[%s2431_s0 + $0xb8] sm:$0xf0] }
  0x33   :  { %946 = vmatpush.bf16.msrb.mxu2 %v1746_v47  ;;  %1116 = vmatpush.bf16.msrb.mxu3 %v1786_v22  ;;  %v1296_v47 = vld [vmem:[%s2431_s0 + $0x98] sm:$0xf]  ;;  %v1694_v22 = vld [vmem:[%s2431_s0 + $0x64] sm:$0xf] }
  0x34   :  { %989 = vmatmul.bf16.gmra.mxu3 %v1265_v56  ;;  %v1719_v56 = vld [vmem:[%s2431_s0 + $0x12c] sm:$0xf] }
  0x36   :  { %913 = vmatpush.bf16.msrb.mxu1 %v1737_v53  ;;  %1015 = vmatpush.bf16.msrb.mxu0 %v1761_v55  ;;  %v1297_v53 = vor.u32 %v1705_v48, %v1296_v47  ;;  %v1305_v55 = vor.u32 %v1706_v52, %v1304_v51  ;;  %v1712_v48 = vld [vmem:[%s2431_s0 + $0xf4] sm:$0xf]  ;;  %v2296_v51 = vld [vmem:[%s2430_s2] ss:$0 sm:$0xff] }
  0x37   :  { %947 = vmatpush.bf16.msrb.mxu2 %v1745_v54  ;;  %1117 = vmatpush.bf16.msrb.mxu3 %v1785_v42  ;;  %v1293_v54 = vor.u32 %v1700_v49, %v1290_v50  ;;  %v1699_v42 = vld [vmem:[%s2431_s0 + $0x88] sm:$0xf0]  ;;  %v1350_v49 = vld [vmem:[%s2431_s0 + $0x114] sm:$0xf0] }
  0x38   :  { %v1353_v50 = vor.u32 %v1712_v48, %v1350_v49 }
  0x3a   :  { %914 = vmatpush.bf16.msrb.mxu1 %v1736_v58  ;;  %1016 = vmatpush.bf16.msrb.mxu0 %v1760_v60  ;;  %v1768_v58 = vld [vmem:[%s2429_s1 + $0x148] sm:$0xff]  ;;  %v1775_v60 = vld [vmem:[%s2429_s1 + $0x180] sm:$0xff] }
  0x3b   :  { %948 = vmatpush.bf16.msrb.mxu2 %v1744_v59  ;;  %1118 = vmatpush.bf16.msrb.mxu3 %v1784_v46  ;;  %v1373_v59 = vor.u32 %v1719_v56, %v1370_v57  ;;  %v1312_v56 = vld [vmem:[%s2431_s0 + $0xa8] sm:$0xf]  ;;  %v1707_v57 = vld [vmem:[%s2431_s0 + $0xc8] sm:$0xf0] }
  0x3e   :  { %915 = vmatpush.bf16.msrb.mxu1 %v1735_v62  ;;  %1017 = vmatpush.bf16.msrb.mxu0 %v1759_v1  ;;  %v1783_v62 = vld [vmem:[%s2429_s1 + $0x1c0] sm:$0xff] }
  0x3f   :  { %949 = vmatpush.bf16.msrb.mxu2 %v1743_v61  ;;  %v1792_v61 = vld [vmem:[%s2429_s1 + $0x208] sm:$0xff]  ;;  %1119 = vmatpush.bf16.msrb.mxu3 %v1783_v62  ;;  %v1714_v1 = vld [vmem:[%s2431_s0 + $0x100] sm:$0xf0]  ;;  %v1708_v62 = vld [vmem:[%s2431_s0 + $0xd0] sm:$0xf0] }
  0x40   :  { %v1333_v6 = vor.u32 %v1714_v1, %v1332_v0 }
  0x41   :  { %916 = vmatmul.bf16.vlgmr.msrb.gmra.mxu1 %v1221_v10  ;;  %1018 = vmatmul.bf16.vlgmr.msrb.gmra.mxu0 %v1233_v11  ;;  %v1685_v10 = vld [vmem:[%s2431_s0 + $0x1c] sm:$0xf]  ;;  %v1242_v11 = vld [vmem:[%s2431_s0 + $0x3c] sm:$0xf0] }
  0x42   :  { %1044 = vmatpush.bf16.msra.mxu1 %v1774_v5  ;;  %1146 = vmatpush.bf16.msra.mxu0 %v1798_v8  ;;  %v1715_v5 = vld [vmem:[%s2431_s0 + $0x108] sm:$0xf0] }
  0x43   :  { %1078 = vmatpush.bf16.msra.mxu2 %v1782_v2  ;;  %v1709_v2 = vld [vmem:[%s2431_s0 + $0xdc] sm:$0xf]  ;;  %v1341_v8 = vor.u32 %v1715_v5, %v1340_v4 }
  0x44   :  { %950 = vmatmul.bf16.vlgmr.msrb.gmra.mxu2 %v1225_v9  ;;  %994 = vmatmul.bf16.gmra.mxu3 %v1301_v18  ;;  %v1329_v7 = vor.u32 %v1709_v2, %v1326_v3  ;;  %v1791_v9 = vld [vmem:[%s2429_s1 + $0x200] sm:$0xff]  ;;  %v1724_v18 = vld [vmem:[%s2431_s0 + $0x150] sm:$0xf0] }
  0x46   :  { %1045 = vmatpush.bf16.msra.mxu1 %v1773_v13  ;;  %1147 = vmatpush.bf16.msra.mxu0 %v1797_v16  ;;  %v1368_v13 = vld [vmem:[%s2431_s0 + $0x128] sm:$0xf] }
  0x47   :  { %1079 = vmatpush.bf16.msra.mxu2 %v1781_v12  ;;  %v1245_v12 = vor.u32 %v1685_v10, %v1242_v11  ;;  %v1362_v16 = vld [vmem:[%s2431_s0 + $0x144] sm:$0xf0] }
  0x4a   :  { %1046 = vmatpush.bf16.msra.mxu1 %v1772_v20  ;;  %1148 = vmatpush.bf16.msra.mxu0 %v1796_v21  ;;  %v1365_v20 = vor.u32 %v1718_v15, %v1362_v16  ;;  %v1377_v21 = vor.u32 %v1724_v18, %v1376_v17  ;;  %v1711_v15 = vld [vmem:[%s2431_s0 + $0xec] sm:$0xf]  ;;  %v1342_v16 = vld [vmem:[%s2431_s0 + $0x10c] sm:$0xf0]  ;;  %v1356_v17 = vld [vmem:[%s2431_s0 + $0xf8] sm:$0xf] }
  0x4b   :  { %1080 = vmatpush.bf16.msra.mxu2 %v1780_v19  ;;  %v1369_v19 = vor.u32 %v1723_v14, %v1368_v13  ;;  %v1716_v13 = vld [vmem:[%s2431_s0 + $0x110] sm:$0xf0]  ;;  %v1717_v18 = vld [vmem:[%s2431_s0 + $0x118] sm:$0xf0] }
  0x4e   :  { %1047 = vmatpush.bf16.msra.mxu1 %v1771_v24  ;;  %1149 = vmatpush.bf16.msra.mxu0 %v1795_v25  ;;  %v1240_v25 = vld [vmem:[%s2431_s0 + $0x18] sm:$0xf] }
  0x4f   :  { %1081 = vmatpush.bf16.msra.mxu2 %v1779_v23  ;;  %v1278_v23 = vld [vmem:[%s2431_s0 + $0x84] sm:$0xf0]  ;;  %v1241_v31 = vor.u32 %v1689_v26, %v1240_v25 }
  0x50   :  { %v1281_v24 = vor.u32 %v1694_v22, %v1278_v23  ;;  %v1357_v22 = vor.u32 %v1717_v18, %v1356_v17 }
  0x51   :  { %921 = vmatmul.bf16.gmra.mxu1 %v1257_v35  ;;  %1023 = vmatmul.bf16.gmra.mxu0 %v1269_v36  ;;  %v1314_v35 = vld [vmem:[%s2431_s0 + $0xcc] sm:$0xf0] }
  0x52   :  { %1048 = vmatpush.bf16.msra.mxu1 %v1770_v33  ;;  %1150 = vmatpush.bf16.msra.mxu0 %v1794_v40  ;;  %v1249_v33 = vor.u32 %v1690_v30, %v1248_v29  ;;  %v1270_v40 = vld [vmem:[%s2431_s0 + $0x7c] sm:$0xf0] }
  0x53   :  { %1082 = vmatpush.bf16.msra.mxu2 %v1778_v32  ;;  %v1237_v32 = vor.u32 %v1684_v27, %v1234_v28 }
  0x54   :  { %955 = vmatmul.bf16.gmra.mxu2 %v1261_v34  ;;  %999 = vmatmul.bf16.gmra.mxu3 %v1337_v41  ;;  %v1703_v34 = vld [vmem:[%s2431_s0 + $0xac] sm:$0xf]  ;;  %v1284_v41 = vld [vmem:[%s2431_s0 + $0x68] sm:$0xf] }
  0x55   :  { %v1317_v36 = vor.u32 %v1703_v34, %v1314_v35  ;;  %v1384_v35 = vld [vmem:[%s2431_s0 + $0x138] sm:$0xf] }
  0x56   :  { %1049 = vmatpush.bf16.msra.mxu1 %v1769_v43  ;;  %1151 = vmatpush.bf16.msra.mxu0 %v1793_v45  ;;  %v1277_v43 = vor.u32 %v1698_v38, %v1276_v37  ;;  %v1285_v45 = vor.u32 %v1699_v42, %v1284_v41  ;;  %v1720_v38 = vld [vmem:[%s2431_s0 + $0x134] sm:$0xf]  ;;  %v1392_v41 = vld [vmem:[%s2431_s0 + $0x140] sm:$0xf]  ;;  %v1726_v42 = vld [vmem:[%s2431_s0 + $0x160] sm:$0xf0] }
  0x57   :  { %1083 = vmatpush.bf16.msra.mxu2 %v1777_v39  ;;  %v1693_v39 = vld [vmem:[%s2431_s0 + $0x5c] sm:$0xf]  ;;  %v1393_v49 = vor.u32 %v1726_v42, %v1392_v41 }
  0x5a   :  { %1050 = vmatpush.bf16.msra.mxu1 %v1768_v58  ;;  %1152 = vmatpush.bf16.msra.mxu0 %v1792_v61  ;;  %v1320_v61 = vld [vmem:[%s2431_s0 + $0xb0] sm:$0xf] }
  0x5b   :  { %1084 = vmatpush.bf16.msra.mxu2 %v1776_v44  ;;  %v1273_v44 = vor.u32 %v1693_v39, %v1270_v40  ;;  %v1321_v2 = vor.u32 %v1708_v62, %v1320_v61  ;;  %v1378_v40 = vld [vmem:[%s2431_s0 + $0x154] sm:$0xf0] }
  0x5c   :  { %v1381_v48 = vor.u32 %v1720_v38, %v1378_v40 }
  0x5e   :  { %1051 = vmatpush.bf16.msra.mxu1 %v1767_v63  ;;  %1153 = vmatpush.bf16.msra.mxu0 %v1791_v9  ;;  %v1313_v63 = vor.u32 %v1707_v57, %v1312_v56 }
  0x5f   :  { %1085 = vmatpush.bf16.msra.mxu2 %v1775_v60  ;;  %v1306_v60 = vld [vmem:[%s2431_s0 + $0xc4] sm:$0xf0] }
  0x61   :  { %926 = vmatmul.bf16.gmra.mxu1 %v1293_v54  ;;  %1028 = vmatmul.bf16.gmra.mxu0 %v1305_v55 }
  0x64   :  { %960 = vmatmul.bf16.gmra.mxu2 %v1297_v53  ;;  %1004 = vmatmul.bf16.gmra.mxu3 %v1373_v59  ;;  %v1702_v59 = vld [vmem:[%s2431_s0 + $0xa4] sm:$0xf] }
  0x65   :  { %v1309_v1 = vor.u32 %v1702_v59, %v1306_v60 }
  0x71   :  { %931 = vmatmul.bf16.gmra.mxu1 %v1329_v7  ;;  %1033 = vmatmul.bf16.gmra.mxu0 %v1341_v8  ;;  %v1386_v7 = vld [vmem:[%s2431_s0 + $0x15c] sm:$0xf0] }
  0x74   :  { %965 = vmatmul.bf16.gmra.mxu2 %v1333_v6  ;;  %1120 = vmatmul.bf16.vlgmr.msrb.gmra.mxu3 %v1245_v12  ;;  %v1721_v6 = vld [vmem:[%s2431_s0 + $0x13c] sm:$0xf]  ;;  %v1348_v12 = vld [vmem:[%s2431_s0 + $0xf0] sm:$0xf] }
  0x75   :  { %v1389_v9 = vor.u32 %v1721_v6, %v1386_v7 }
  0x81   :  { %936 = vmatmul.bf16.gmra.mxu1 %v1365_v20  ;;  %1038 = vmatmul.bf16.gmra.mxu0 %v1377_v21  ;;  %v1345_v21 = vor.u32 %v1711_v15, %v1342_v16 }
  0x84   :  { %970 = vmatmul.bf16.gmra.mxu2 %v1369_v19  ;;  %1125 = vmatmul.bf16.gmra.mxu3 %v1281_v24  ;;  %v1349_v19 = vor.u32 %v1716_v13, %v1348_v12 }
  0x91   :  { %1052 = vmatmul.bf16.vlgmr.msra.gmra.mxu1 %v1237_v32  ;;  %1154 = vmatmul.bf16.vlgmr.msra.gmra.mxu0 %v1249_v33 }
  0x94   :  { %1086 = vmatmul.bf16.vlgmr.msra.gmra.mxu2 %v1241_v31  ;;  %1130 = vmatmul.bf16.gmra.mxu3 %v1317_v36  ;;  %v1725_v36 = vld [vmem:[%s2431_s0 + $0x158] sm:$0xf0] }
  0x9e   :  { %v883_v46 = vpop.f32.mrf.mxu0  ;;  %v2285_v47 = vpop.f32.mrf.mxu1 }
  0x9f   :  { %v884_v20 = vadd.f32 %v2296_v51, %v883_v46  ;;  %v894_v7 = vadd.f32 %v2296_v51, %v2285_v47 }
  0xa1   :  { %1057 = vmatmul.bf16.gmra.mxu1 %v1273_v44  ;;  %1159 = vmatmul.bf16.gmra.mxu0 %v1285_v45  ;;  %v1385_v44 = vor.u32 %v1725_v36, %v1384_v35 }
  0xa4   :  { %1091 = vmatmul.bf16.gmra.mxu2 %v1277_v43  ;;  %1135 = vmatmul.bf16.gmra.mxu3 %v1353_v50 }
  0xa6   :  { %v885_v53 = vpop.f32.mrf.mxu0  ;;  %v2298_v54 = vpop.f32.mrf.mxu1 }
  0xa7   :  { %v903_v52 = vpop.f32.mrf.mxu2  ;;  %v985_v58 = vpop.f32.mrf.mxu3  ;;  %v886_v29 = vadd.f32 %v2296_v51, %v885_v53  ;;  %v896_v17 = vadd.f32 %v2296_v51, %v2298_v54 }
  0xa8   :  { %v2301_v55 = vadd.f32 %v2296_v51, %v903_v52 }
  0xae   :  { %v888_v3 = vpop.f32.mrf.mxu0  ;;  %v2321_v4 = vpop.f32.mrf.mxu1 }
  0xaf   :  { %v905_v0 = vpop.f32.mrf.mxu2  ;;  %v987_v8 = vpop.f32.mrf.mxu3  ;;  %v889_v45 = vadd.f32 %v2296_v51, %v888_v3 }
  0xb0   :  { %v2324_v5 = vadd.f32 %v2296_v51, %v905_v0 }
  0xb1   :  { %1062 = vmatmul.bf16.gmra.mxu1 %v1309_v1  ;;  %1164 = vmatmul.bf16.gmra.mxu0 %v1321_v2 }
  0xb4   :  { %1096 = vmatmul.bf16.gmra.mxu2 %v1313_v63  ;;  %1140 = vmatmul.bf16.gmra.mxu3 %v1389_v9 }
  0xb6   :  { %v890_v10 = vpop.f32.mrf.mxu0  ;;  %v2332_v11 = vpop.f32.mrf.mxu1 }
  0xb7   :  { %v990_v14 = vpop.f32.mrf.mxu3  ;;  %v891_v60 = vadd.f32 %v2296_v51, %v890_v10 }
  0xbe   :  { %v917_v23 = vpop.f32.mrf.mxu1  ;;  %v1019_v24 = vpop.f32.mrf.mxu0 }
  0xbf   :  { %v918_v25 = vadd.f32 %v917_v23, %v884_v20  ;;  %v992_v26 = vpop.f32.mrf.mxu3 }
  0xc1   :  { %1067 = vmatmul.bf16.gmra.mxu1 %v1345_v21  ;;  %1169 = vmatmul.bf16.gmra.mxu0 %v1357_v22 }
  0xc4   :  { %1101 = vmatmul.bf16.gmra.mxu2 %v1349_v19 }
  0xc6   :  { %v919_v31 = vpop.f32.mrf.mxu1  ;;  %v1021_v32 = vpop.f32.mrf.mxu0 }
  0xc7   :  { %v951_v27 = vpop.f32.mrf.mxu2  ;;  %v920_v33 = vadd.f32 %v919_v31, %v886_v29  ;;  %v995_v37 = vpop.f32.mrf.mxu3 }
  0xc8   :  { %v952_v28 = vadd.f32 %v951_v27, %v918_v25 }
  0xca   :  { %v986_v30 = vadd.f32 %v985_v58, %v952_v28 }
  0xcc   :  { %v2354_v34 = vadd.f32 %v1019_v24, %v986_v30  ;;  %v899_v24 = vadd.f32 %v2296_v51, %v2321_v4 }
  0xce   :  { %v922_v50 = vpop.f32.mrf.mxu1  ;;  %v1024_v52 = vpop.f32.mrf.mxu0 }
  0xcf   :  { %v953_v39 = vpop.f32.mrf.mxu2  ;;  %v923_v53 = vadd.f32 %v922_v50, %v889_v45  ;;  %v997_v57 = vpop.f32.mrf.mxu3 }
  0xd0   :  { %v954_v43 = vadd.f32 %v953_v39, %v920_v33 }
  0xd1   :  { %1072 = vmatmul.bf16.gmra.mxu1 %v1381_v48  ;;  %1174 = vmatmul.bf16.gmra.mxu0 %v1393_v49 }
  0xd2   :  { %v988_v46 = vadd.f32 %v987_v8, %v954_v43 }
  0xd4   :  { %1106 = vmatmul.bf16.gmra.mxu2 %v1385_v44  ;;  %v2375_v56 = vadd.f32 %v1021_v32, %v988_v46  ;;  %v901_v32 = vadd.f32 %v2296_v51, %v2332_v11 }
  0xd6   :  { %v924_v62 = vpop.f32.mrf.mxu1  ;;  %v1026_v63 = vpop.f32.mrf.mxu0 }
  0xd7   :  { %v956_v58 = vpop.f32.mrf.mxu2  ;;  %v925_v0 = vadd.f32 %v924_v62, %v891_v60  ;;  %v1000_v2 = vpop.f32.mrf.mxu3 }
  0xd8   :  { %v957_v59 = vadd.f32 %v956_v58, %v923_v53 }
  0xda   :  { %v991_v61 = vadd.f32 %v990_v14, %v957_v59 }
  0xdc   :  { %v2378_v1 = vadd.f32 %v1024_v52, %v991_v61 }
  0xde   :  { %v927_v9 = vpop.f32.mrf.mxu1  ;;  %v1029_v12 = vpop.f32.mrf.mxu0 }
  0xdf   :  { %v958_v3 = vpop.f32.mrf.mxu2  ;;  %v928_v13 = vadd.f32 %v927_v9, %v894_v7  ;;  %v1002_v14 = vpop.f32.mrf.mxu3 }
  0xe0   :  { %v959_v6 = vadd.f32 %v958_v3, %v925_v0 }
  0xe2   :  { %v993_v8 = vadd.f32 %v992_v26, %v959_v6 }
  0xe4   :  { %v2382_v15 = vadd.f32 %v1026_v63, %v993_v8 }
  0xe6   :  { %v929_v19 = vpop.f32.mrf.mxu1  ;;  %v1031_v20 = vpop.f32.mrf.mxu0 }
  0xe7   :  { %v961_v16 = vpop.f32.mrf.mxu2  ;;  %v930_v21 = vadd.f32 %v929_v19, %v896_v17  ;;  %v1005_v26 = vpop.f32.mrf.mxu3 }
  0xe8   :  { %v962_v10 = vadd.f32 %v961_v16, %v928_v13 }
  0xea   :  { %v996_v18 = vadd.f32 %v995_v37, %v962_v10 }
  0xec   :  { %v2386_v22 = vadd.f32 %v1029_v12, %v996_v18 }
  0xee   :  { %v932_v27 = vpop.f32.mrf.mxu1  ;;  %v1034_v28 = vpop.f32.mrf.mxu0 }
  0xef   :  { %v963_v23 = vpop.f32.mrf.mxu2  ;;  %v933_v29 = vadd.f32 %v932_v27, %v899_v24  ;;  %v1007_v38 = vpop.f32.mrf.mxu3 }
  0xf0   :  { %v964_v47 = vadd.f32 %v963_v23, %v930_v21 }
  0xf2   :  { %v998_v25 = vadd.f32 %v997_v57, %v964_v47 }
  0xf4   :  { %v2390_v30 = vadd.f32 %v1031_v20, %v998_v25 }
  0xf6   :  { %v934_v35 = vpop.f32.mrf.mxu1  ;;  %v1036_v36 = vpop.f32.mrf.mxu0 }
  0xf7   :  { %v966_v31 = vpop.f32.mrf.mxu2  ;;  %v935_v37 = vadd.f32 %v934_v35, %v901_v32  ;;  %v1121_v46 = vpop.f32.mrf.mxu3 }
  0xf8   :  { %v967_v54 = vadd.f32 %v966_v31, %v933_v29 }
  0xfa   :  { %v1001_v33 = vadd.f32 %v1000_v2, %v967_v54 }
  0xfc   :  { %v2394_v39 = vadd.f32 %v1034_v28, %v1001_v33 }
  0xfe   :  { %v937_v42 = vpop.f32.mrf.mxu1  ;;  %v1039_v43 = vpop.f32.mrf.mxu0 }
  0xff   :  { %v968_v4 = vpop.f32.mrf.mxu2  ;;  %v938_v44 = vadd.f32 %v937_v42, %v2301_v55  ;;  %v1123_v59 = vpop.f32.mrf.mxu3 }
 0x100   :  { %v969_v40 = vadd.f32 %v968_v4, %v935_v37 }
 0x102   :  { %v1003_v41 = vadd.f32 %v1002_v14, %v969_v40 }
 0x104   :  { %v2397_v45 = vadd.f32 %v1036_v36, %v1003_v41 }
 0x106   :  { %v939_v11 = vpop.f32.mrf.mxu1  ;;  %v1041_v50 = vpop.f32.mrf.mxu0 }
 0x107   :  { %v971_v48 = vpop.f32.mrf.mxu2  ;;  %v940_v52 = vadd.f32 %v939_v11, %v2324_v5  ;;  %v1126_v3 = vpop.f32.mrf.mxu3 }
 0x108   :  { %v972_v49 = vadd.f32 %v971_v48, %v938_v44 }
 0x10a   :  { %v1006_v51 = vadd.f32 %v1005_v26, %v972_v49 }
 0x10c   :  { %v2400_v53 = vadd.f32 %v1039_v43, %v1006_v51 }
 0x10e   :  { %v1053_v61 = vpop.f32.mrf.mxu1  ;;  %v1155_v62 = vpop.f32.mrf.mxu0 }
 0x10f   :  { %v973_v57 = vpop.f32.mrf.mxu2  ;;  %v1054_v55 = vadd.f32 %v1053_v61, %v2354_v34  ;;  %v1128_v18 = vpop.f32.mrf.mxu3 }
 0x110   :  { %v974_v58 = vadd.f32 %v973_v57, %v940_v52 }
 0x112   :  { %v1008_v60 = vadd.f32 %v1007_v38, %v974_v58 }
 0x114   :  { %v2402_v63 = vadd.f32 %v1041_v50, %v1008_v60 }
 0x116   :  { %v1055_v6 = vpop.f32.mrf.mxu1  ;;  %v1157_v7 = vpop.f32.mrf.mxu0 }
 0x117   :  { %v1087_v0 = vpop.f32.mrf.mxu2  ;;  %v1056_v8 = vadd.f32 %v1055_v6, %v2375_v56  ;;  %v1131_v28 = vpop.f32.mrf.mxu3 }
 0x118   :  { %v1088_v2 = vadd.f32 %v1087_v0, %v1054_v55 }
 0x11a   :  { %v1122_v5 = vadd.f32 %v1121_v46, %v1088_v2 }
 0x11c   :  { %v1156_v13 = vadd.f32 %v1155_v62, %v1122_v5 }
 0x11e   :  { %v1058_v10 = vpop.f32.mrf.mxu1  ;;  %v1160_v14 = vpop.f32.mrf.mxu0  ;;  %v1180_v19 = vmax.f32 %v1156_v13, 0.0 }
 0x11f   :  { %v1089_v9 = vpop.f32.mrf.mxu2  ;;  %v1059_v34 = vadd.f32 %v1058_v10, %v2378_v1  ;;  %v1133_v40 = vpop.f32.mrf.mxu3 }
 0x120   :  { %v1090_v12 = vadd.f32 %v1089_v9, %v1056_v8 }
 0x122   :  { %v1124_v16 = vadd.f32 %v1123_v59, %v1090_v12 }
 0x124   :  { %v1158_v17 = vadd.f32 %v1157_v7, %v1124_v16 }
 0x126   :  { %v1181_v20 = vmax.f32 %v1158_v17, 0.0  ;;  %v1060_v47 = vpop.f32.mrf.mxu1  ;;  %v1162_v24 = vpop.f32.mrf.mxu0 }
 0x127   :  { %v1092_v21 = vpop.f32.mrf.mxu2  ;;  %v1061_v25 = vadd.f32 %v1060_v47, %v2382_v15  ;;  %v1136_v11 = vpop.f32.mrf.mxu3 }
 0x128   :  { %v1802_v23 = vpack.c.bf16 %v1181_v20, %v1180_v19  ;;  %v1093_v56 = vadd.f32 %v1092_v21, %v1059_v34 }
 0x12a   :  { %1803 = vst [vmem:[%s2432_s3] sm:$0xff] %v1802_v23   ;;  %v1127_v26 = vadd.f32 %v1126_v3, %v1093_v56 }
 0x12c   :  { %v1161_v31 = vadd.f32 %v1160_v14, %v1127_v26 }
 0x12e   :  { %v1063_v32 = vpop.f32.mrf.mxu1  ;;  %v1165_v33 = vpop.f32.mrf.mxu0  ;;  %v1182_v35 = vmax.f32 %v1161_v31, 0.0 }
 0x12f   :  { %v1094_v27 = vpop.f32.mrf.mxu2  ;;  %v1064_v37 = vadd.f32 %v1063_v32, %v2386_v22  ;;  %v1138_v0 = vpop.f32.mrf.mxu3 }
 0x130   :  { %v1095_v29 = vadd.f32 %v1094_v27, %v1061_v25 }
 0x132   :  { %v1129_v54 = vadd.f32 %v1128_v18, %v1095_v29 }
 0x134   :  { %v1163_v1 = vadd.f32 %v1162_v24, %v1129_v54 }
 0x136   :  { %v1183_v36 = vmax.f32 %v1163_v1, 0.0  ;;  %v1065_v41 = vpop.f32.mrf.mxu1  ;;  %v1167_v42 = vpop.f32.mrf.mxu0 }
 0x137   :  { %v1097_v38 = vpop.f32.mrf.mxu2  ;;  %v1066_v43 = vadd.f32 %v1065_v41, %v2390_v30  ;;  %v1141_v10 = vpop.f32.mrf.mxu3 }
 0x138   :  { %v1807_v4 = vpack.c.bf16 %v1183_v36, %v1182_v35  ;;  %v1098_v15 = vadd.f32 %v1097_v38, %v1064_v37 }
 0x13a   :  { %1824 = vst [vmem:[%s2432_s3 + $0x8] sm:$0xff] %v1807_v4   ;;  %v1132_v44 = vadd.f32 %v1131_v28, %v1098_v15 }
 0x13c   :  { %v1166_v49 = vadd.f32 %v1165_v33, %v1132_v44 }
 0x13e   :  { %v1068_v50 = vpop.f32.mrf.mxu1  ;;  %v1170_v52 = vpop.f32.mrf.mxu0  ;;  %v1184_v57 = vmax.f32 %v1166_v49, 0.0 }
 0x13f   :  { %v1099_v46 = vpop.f32.mrf.mxu2  ;;  %v1069_v59 = vadd.f32 %v1068_v50, %v2394_v39  ;;  %v1143_v56 = vpop.f32.mrf.mxu3 }
 0x140   :  { %v1100_v48 = vadd.f32 %v1099_v46, %v1066_v43 }
 0x142   :  { %v1134_v51 = vadd.f32 %v1133_v40, %v1100_v48 }
 0x144   :  { %v1168_v22 = vadd.f32 %v1167_v42, %v1134_v51 }
 0x146   :  { %v1185_v58 = vmax.f32 %v1168_v22, 0.0  ;;  %v1070_v62 = vpop.f32.mrf.mxu1  ;;  %v1172_v3 = vpop.f32.mrf.mxu0 }
 0x147   :  { %v1102_v60 = vpop.f32.mrf.mxu2  ;;  %v1071_v55 = vadd.f32 %v1070_v62, %v2397_v45 }
 0x148   :  { %v1812_v61 = vpack.c.bf16 %v1185_v58, %v1184_v57  ;;  %v1103_v30 = vadd.f32 %v1102_v60, %v1069_v59 }
 0x14a   :  { %1825 = vst [vmem:[%s2432_s3 + $0x10] sm:$0xff] %v1812_v61   ;;  %v1137_v2 = vadd.f32 %v1136_v11, %v1103_v30 }
 0x14c   :  { %v1171_v8 = vadd.f32 %v1170_v52, %v1137_v2 }
 0x14e   :  { %v1073_v9 = vpop.f32.mrf.mxu1  ;;  %v1186_v39 = vmax.f32 %v1171_v8, 0.0  ;;  %v1175_v18 = vpop.f32.mrf.mxu0 }
 0x14f   :  { %v1104_v6 = vpop.f32.mrf.mxu2  ;;  %v1074_v16 = vadd.f32 %v1073_v9, %v2400_v53 }
 0x150   :  { %v1105_v7 = vadd.f32 %v1104_v6, %v1071_v55 }
 0x152   :  { %v1139_v5 = vadd.f32 %v1138_v0, %v1105_v7 }
 0x154   :  { %v1173_v12 = vadd.f32 %v1172_v3, %v1139_v5 }
 0x156   :  { %v1187_v13 = vmax.f32 %v1173_v12, 0.0  ;;  %v1075_v19 = vpop.f32.mrf.mxu1  ;;  %v1177_v25 = vpop.f32.mrf.mxu0 }
 0x157   :  { %v1107_v14 = vpop.f32.mrf.mxu2  ;;  %v1076_v20 = vadd.f32 %v1075_v19, %v2402_v63 }
 0x158   :  { %v1817_v17 = vpack.c.bf16 %v1187_v13, %v1186_v39  ;;  %v1108_v45 = vadd.f32 %v1107_v14, %v1074_v16 }
 0x15a   :  { %1826 = vst [vmem:[%s2432_s3 + $0x18] sm:$0xff] %v1817_v17   ;;  %v1142_v34 = vadd.f32 %v1141_v10, %v1108_v45 }
 0x15c   :  { %v1176_v47 = vadd.f32 %v1175_v18, %v1142_v34 }
 0x15e   :  { %v1188_v26 = vmax.f32 %v1176_v47, 0.0 }
 0x15f   :  { %v1109_v21 = vpop.f32.mrf.mxu2 }
 0x160   :  { %v1110_v23 = vadd.f32 %v1109_v21, %v1076_v20 }
 0x162   :  { %v1144_v24 = vadd.f32 %v1143_v56, %v1110_v23 }
 0x164   :  { %v1178_v53 = vadd.f32 %v1177_v25, %v1144_v24 }
 0x166   :  { %v1189_v27 = vmax.f32 %v1178_v53, 0.0 }
 0x168   :  { %v1822_v28 = vpack.c.bf16 %v1189_v27, %v1188_v26 }
 0x16a   :  { %1827 = vst [vmem:[%s2432_s3 + $0x20] sm:$0xff] %v1822_v28  }

</bundles_post_ra>
